<compile_context>
chip_gen: v7x
topology: tpu7x:2x2x1
jax: 0.10.0
libtpu: 0.0.40
codegen_flags: <defaults>
</compile_context>

<pallas_src>
import functools

import jax
import jax.numpy as jnp
from jax.experimental import pallas as pl
from jax.experimental.pallas import tpu as pltpu


def actor_kernel(obs_ref, act_ref, w1_ref, b1_ref, w2_ref, b2_ref, w3_ref, b3_ref,
                 probs_ref, logp_ref, *, approx_recip=False):
    # Batch rides the sublane axis; every operand keeps its natural
    # (batch, features) layout, so no in-kernel transposes are needed.
    x = obs_ref[...]                                                     # (tm, obs_dim)
    h1 = jnp.dot(x, w1_ref[...], preferred_element_type=jnp.float32) + b1_ref[...]
    h1 = jnp.maximum(h1, 0.0)                                            # ReLU (f32 VPU)
    h2 = jnp.dot(h1.astype(w2_ref.dtype), w2_ref[...],
                 preferred_element_type=jnp.float32) + b2_ref[...]
    h2 = jnp.maximum(h2, 0.0)                                            # ReLU
    logits = jnp.dot(h2.astype(w3_ref.dtype), w3_ref[...],
                     preferred_element_type=jnp.float32) + b3_ref[...]   # (tm, act_dim)

    # Softmax over the action (lane) axis; batch rows are independent.
    m = jnp.max(logits, axis=-1, keepdims=True)
    e = jnp.exp(logits - m)
    s = jnp.sum(e, axis=-1, keepdims=True)
    if approx_recip:
        inv = pl.reciprocal(s, approx=True)     # EUP slot; not 1e-5 accurate
    else:
        inv = 1.0 / s                           # one divide per row, then act_dim muls
    probs_ref[...] = (e * inv).astype(probs_ref.dtype)

    # Fused Categorical.log_prob(act) = logits[act] - logsumexp(logits).
    col = jax.lax.broadcasted_iota(jnp.int32, logits.shape, 1)
    sel = jnp.sum(jnp.where(col == act_ref[...], logits, 0.0), axis=-1, keepdims=True)
    logp_ref[...] = (sel - m - jnp.log(s)).astype(logp_ref.dtype)


def actor_forward(obs, params, act=None, *, tm=2048, use_bf16=False, approx_recip=False):
    """obs: (B, obs_dim) float; act: optional (B,) int actions.

    Returns (probs, logp): probs (B, act_dim) are the Categorical distribution's
    parameters; logp (B,) is the log prob of `act` under it (None if act is None).
    """
    w1, b1, w2, b2, w3, b3 = params            # PyTorch layout: W (out, in), b (out,)
    B, obs_dim = obs.shape
    h1_dim, h2_dim, act_dim = w1.shape[0], w2.shape[0], w3.shape[0]

    # Tiny one-time weight transposes so the kernel computes x @ W^T as plain
    # row-major matmuls; biases become (1, out) rows broadcast over sublanes.
    cdt = jnp.bfloat16 if use_bf16 else jnp.float32
    w1t, w2t, w3t = w1.T.astype(cdt), w2.T.astype(cdt), w3.T.astype(cdt)
    b1r = b1.reshape(1, h1_dim).astype(jnp.float32)
    b2r = b2.reshape(1, h2_dim).astype(jnp.float32)
    b3r = b3.reshape(1, act_dim).astype(jnp.float32)
    # TODO(synk): the obs bf16 cast only pays off if obs already arrives in bf16
    # upstream (a wrapper cast re-reads obs once); demo stays f32 end-to-end.
    obs_c = obs.astype(cdt)
    act2d = (jnp.zeros((B, 1), jnp.int32) if act is None
             else act.reshape(B, 1).astype(jnp.int32))

    # Batch tile on the sublane axis -> multiple of 8. Large tiles amortize the
    # ~0.35 us per-grid-step overhead (sweep tm in {1024..8192}); clamp to
    # ceil(B/2) so the grid keeps >= 2 tiles when the batch allows it, giving
    # both v7x TensorCores work (dimension_semantics=("parallel",)).
    tm = max(8, (min(tm, 8192) // 8) * 8)
    b_pad = -(-B // 8) * 8
    two_tile_cap = max(8, ((-(-b_pad // 2) + 7) // 8) * 8)
    tm = min(tm, two_tile_cap)
    n_tiles = pl.cdiv(B, tm)

    kernel = functools.partial(actor_kernel, approx_recip=approx_recip)
    probs, logp2d = pl.pallas_call(
        kernel,
        out_shape=(jax.ShapeDtypeStruct((B, act_dim), jnp.float32),
                   jax.ShapeDtypeStruct((B, 1), jnp.float32)),
        grid=(n_tiles,),
        in_specs=[
            pl.BlockSpec((tm, obs_dim), lambda i: (i, 0)),      # obs tile (ragged tail masked)
            pl.BlockSpec((tm, 1), lambda i: (i, 0)),            # actions
            pl.BlockSpec((obs_dim, h1_dim), lambda i: (0, 0)),  # W1^T (VMEM-resident)
            pl.BlockSpec((1, h1_dim), lambda i: (0, 0)),        # b1
            pl.BlockSpec((h1_dim, h2_dim), lambda i: (0, 0)),   # W2^T
            pl.BlockSpec((1, h2_dim), lambda i: (0, 0)),        # b2
            pl.BlockSpec((h2_dim, act_dim), lambda i: (0, 0)),  # W3^T
            pl.BlockSpec((1, act_dim), lambda i: (0, 0)),       # b3
        ],
        out_specs=(pl.BlockSpec((tm, act_dim), lambda i: (i, 0)),
                   pl.BlockSpec((tm, 1), lambda i: (i, 0))),
        compiler_params=pltpu.CompilerParams(
            dimension_semantics=("parallel",)),
    )(obs_c, act2d, w1t, b1r, w2t, b2r, w3t, b3r)

    logp = None if act is None else logp2d[:, 0]
    # TODO(synk): torch.distributions.Categorical itself has no Pallas
    # equivalent; we return its parameters (probs) plus log_prob instead.
    return probs, logp


def make_params(key, obs_dim, act_dim, hidden_sizes=(64, 64)):
    """Deterministic synthetic init (stands in for init_(nn.Linear(...))).
    PyTorch layout: weights (out_features, in_features), biases (out_features,)."""
    k1, k2, k3, k4 = jax.random.split(key, 4)
    h1, h2 = hidden_sizes
    w1 = jax.random.normal(k1, (h1, obs_dim), jnp.float32) * (1.0 / jnp.sqrt(obs_dim))
    b1 = jax.random.normal(k4, (h1,), jnp.float32) * 0.1
    w2 = jax.random.normal(k2, (h2, h1), jnp.float32) * (1.0 / jnp.sqrt(h1))
    b2 = jnp.full((h2,), 0.05, jnp.float32)
    w3 = jax.random.normal(k3, (act_dim, h2), jnp.float32) * (1.0 / jnp.sqrt(h2))
    b3 = jnp.full((act_dim,), -0.02, jnp.float32)
    return w1, b1, w2, b2, w3, b3


if __name__ == "__main__":
    key = jax.random.PRNGKey(0)
    k_obs, k_par, k_act = jax.random.split(key, 3)

    B, obs_dim, act_dim = 200, 16, 6          # ragged batch exercises masked tail
    hidden_sizes = (64, 64)

    obs = jax.random.normal(k_obs, (B, obs_dim), jnp.float32)
    act = jax.random.randint(k_act, (B,), 0, act_dim)
    params = make_params(k_par, obs_dim, act_dim, hidden_sizes)

    # f32 + exact reciprocal so the 1e-5 check holds; for prod on v6e/v7x use
    # use_bf16=True (and approx_recip=True) at the call boundary.
    probs, logp = actor_forward(obs, params, act=act)
    probs = jax.block_until_ready(probs)
    logp = jax.block_until_ready(logp)

    # Pure-JAX reference (PyTorch nn.Linear semantics: x @ W.T + b).
    w1, b1, w2, b2, w3, b3 = params
    h = jnp.maximum(obs @ w1.T + b1, 0.0)
    h = jnp.maximum(h @ w2.T + b2, 0.0)
    logits = h @ w3.T + b3
    ref_probs = jax.nn.softmax(logits, axis=-1)
    ref_logp = jax.nn.log_softmax(logits, axis=-1)[jnp.arange(B), act]

    assert probs.shape == (B, act_dim)
    assert logp.shape == (B,)
    assert jnp.allclose(probs, ref_probs, atol=1e-5, rtol=1e-5)
    assert jnp.allclose(logp, ref_logp, atol=1e-5, rtol=1e-5)

    # act=None path (distribution parameters only).
    probs2, logp2 = actor_forward(obs, params)
    probs2 = jax.block_until_ready(probs2)
    assert logp2 is None
    assert jnp.allclose(probs2, ref_probs, atol=1e-5, rtol=1e-5)

    print("KERNEL_OK")
</pallas_src>

<mosaic_0001>
module attributes {stable_mosaic.version = 11 : i64} {
  func.func @actor_kernel(%arg0: i32, %arg1: memref<104x16xf32, #tpu.memory_space<vmem>>, %arg2: memref<104x1xi32, #tpu.memory_space<vmem>>, %arg3: memref<16x64xf32, #tpu.memory_space<vmem>>, %arg4: memref<1x64xf32, #tpu.memory_space<vmem>>, %arg5: memref<64x64xf32, #tpu.memory_space<vmem>>, %arg6: memref<1x64xf32, #tpu.memory_space<vmem>>, %arg7: memref<64x6xf32, #tpu.memory_space<vmem>>, %arg8: memref<1x6xf32, #tpu.memory_space<vmem>>, %arg9: memref<104x6xf32, #tpu.memory_space<vmem>>, %arg10: memref<104x1xf32, #tpu.memory_space<vmem>>) attributes {dimension_semantics = [#tpu.dimension_semantics<parallel>], iteration_bounds = array<i64: 2>, scalar_prefetch = 0 : i64, scratch_operands = 0 : i64, tpu.core_type = #tpu.core_type<tc>, window_params = [{transform_indices = @transform_0, window_bounds = array<i64: 104, 16>}, {transform_indices = @transform_1, window_bounds = array<i64: 104, 1>}, {pipeline_mode = #tpu.pipeline_mode<synchronous>, transform_indices = @transform_2, window_bounds = array<i64: 16, 64>}, {pipeline_mode = #tpu.pipeline_mode<synchronous>, transform_indices = @transform_3, window_bounds = array<i64: 1, 64>}, {pipeline_mode = #tpu.pipeline_mode<synchronous>, transform_indices = @transform_4, window_bounds = array<i64: 64, 64>}, {pipeline_mode = #tpu.pipeline_mode<synchronous>, transform_indices = @transform_5, window_bounds = array<i64: 1, 64>}, {pipeline_mode = #tpu.pipeline_mode<synchronous>, transform_indices = @transform_6, window_bounds = array<i64: 64, 6>}, {pipeline_mode = #tpu.pipeline_mode<synchronous>, transform_indices = @transform_7, window_bounds = array<i64: 1, 6>}, {transform_indices = @transform_8, window_bounds = array<i64: 104, 6>}, {transform_indices = @transform_9, window_bounds = array<i64: 104, 1>}]} {
    %c0 = arith.constant 0 : index
    %c0_0 = arith.constant 0 : index
    %0 = vector.load %arg1[%c0, %c0_0] : memref<104x16xf32, #tpu.memory_space<vmem>>, vector<104x16xf32>
    %c0_1 = arith.constant 0 : index
    %c0_2 = arith.constant 0 : index
    %1 = vector.load %arg3[%c0_1, %c0_2] : memref<16x64xf32, #tpu.memory_space<vmem>>, vector<16x64xf32>
    %cst = arith.constant dense<0.000000e+00> : vector<104x64xf32>
    %2 = tpu.matmul %0, %1, %cst {dimension_numbers = #tpu.dot_dimension_numbers<[1], [0], [0], [1], [0, 0, 1, 1], [], []>} : vector<104x16xf32>, vector<16x64xf32>, vector<104x64xf32> -> vector<104x64xf32>
    %c0_3 = arith.constant 0 : index
    %c0_4 = arith.constant 0 : index
    %3 = vector.load %arg4[%c0_3, %c0_4] : memref<1x64xf32, #tpu.memory_space<vmem>>, vector<1x64xf32>
    %4 = vector.broadcast %3 : vector<1x64xf32> to vector<104x64xf32>
    %5 = arith.addf %2, %4 : vector<104x64xf32>
    %cst_5 = arith.constant 0.000000e+00 : f32
    %6 = vector.broadcast %cst_5 : f32 to vector<104x64xf32>
    %7 = arith.maximumf %5, %6 : vector<104x64xf32>
    %c0_6 = arith.constant 0 : index
    %c0_7 = arith.constant 0 : index
    %8 = vector.load %arg5[%c0_6, %c0_7] : memref<64x64xf32, #tpu.memory_space<vmem>>, vector<64x64xf32>
    %cst_8 = arith.constant dense<0.000000e+00> : vector<104x64xf32>
    %9 = tpu.matmul %7, %8, %cst_8 {dimension_numbers = #tpu.dot_dimension_numbers<[1], [0], [0], [1], [0, 0, 1, 1], [], []>} : vector<104x64xf32>, vector<64x64xf32>, vector<104x64xf32> -> vector<104x64xf32>
    %c0_9 = arith.constant 0 : index
    %c0_10 = arith.constant 0 : index
    %10 = vector.load %arg6[%c0_9, %c0_10] : memref<1x64xf32, #tpu.memory_space<vmem>>, vector<1x64xf32>
    %11 = vector.broadcast %10 : vector<1x64xf32> to vector<104x64xf32>
    %12 = arith.addf %9, %11 : vector<104x64xf32>
    %cst_11 = arith.constant 0.000000e+00 : f32
    %13 = vector.broadcast %cst_11 : f32 to vector<104x64xf32>
    %14 = arith.maximumf %12, %13 : vector<104x64xf32>
    %c0_12 = arith.constant 0 : index
    %c0_13 = arith.constant 0 : index
    %15 = vector.load %arg7[%c0_12, %c0_13] : memref<64x6xf32, #tpu.memory_space<vmem>>, vector<64x6xf32>
    %cst_14 = arith.constant dense<0.000000e+00> : vector<104x6xf32>
    %16 = tpu.matmul %14, %15, %cst_14 {dimension_numbers = #tpu.dot_dimension_numbers<[1], [0], [0], [1], [0, 0, 1, 1], [], []>} : vector<104x64xf32>, vector<64x6xf32>, vector<104x6xf32> -> vector<104x6xf32>
    %c0_15 = arith.constant 0 : index
    %c0_16 = arith.constant 0 : index
    %17 = vector.load %arg8[%c0_15, %c0_16] : memref<1x6xf32, #tpu.memory_space<vmem>>, vector<1x6xf32>
    %18 = vector.broadcast %17 : vector<1x6xf32> to vector<104x6xf32>
    %19 = arith.addf %16, %18 : vector<104x6xf32>
    %cst_17 = arith.constant dense<0xFF800000> : vector<104xf32>
    %20 = vector.multi_reduction <maximumf>, %19, %cst_17 [1] : vector<104x6xf32> to vector<104xf32>
    %21 = vector.shape_cast %20 : vector<104xf32> to vector<104x1xf32>
    %22 = vector.broadcast %21 : vector<104x1xf32> to vector<104x6xf32>
    %23 = arith.subf %19, %22 : vector<104x6xf32>
    %24 = math.exp %23 : vector<104x6xf32>
    %cst_18 = arith.constant dense<0.000000e+00> : vector<104xf32>
    %25 = vector.multi_reduction <add>, %24, %cst_18 [1] : vector<104x6xf32> to vector<104xf32>
    %26 = vector.shape_cast %25 : vector<104xf32> to vector<104x1xf32>
    %cst_19 = arith.constant 1.000000e+00 : f32
    %27 = vector.broadcast %cst_19 : f32 to vector<104x1xf32>
    %28 = arith.divf %27, %26 : vector<104x1xf32>
    %29 = vector.broadcast %28 : vector<104x1xf32> to vector<104x6xf32>
    %30 = arith.mulf %24, %29 : vector<104x6xf32>
    %c0_20 = arith.constant 0 : index
    %c0_21 = arith.constant 0 : index
    %31 = vector.load %arg9[%c0_20, %c0_21] : memref<104x6xf32, #tpu.memory_space<vmem>>, vector<104x6xf32>
    tpu.vector_store %arg9[%c0_20, %c0_21], %30 {strides = array<i32>} : memref<104x6xf32, #tpu.memory_space<vmem>>, vector<104x6xf32>,
    %32 = tpu.iota {dimensions = array<i32: 1>} : vector<104x6xi32>
    %c0_22 = arith.constant 0 : index
    %c0_23 = arith.constant 0 : index
    %33 = vector.load %arg2[%c0_22, %c0_23] : memref<104x1xi32, #tpu.memory_space<vmem>>, vector<104x1xi32>
    %34 = vector.broadcast %33 : vector<104x1xi32> to vector<104x6xi32>
    %35 = arith.cmpi eq, %32, %34 : vector<104x6xi32>
    %cst_24 = arith.constant 0.000000e+00 : f32
    %36 = vector.broadcast %cst_24 : f32 to vector<104x6xf32>
    %37 = arith.select %35, %19, %36 : vector<104x6xi1>, vector<104x6xf32>
    %cst_25 = arith.constant dense<0.000000e+00> : vector<104xf32>
    %38 = vector.multi_reduction <add>, %37, %cst_25 [1] : vector<104x6xf32> to vector<104xf32>
    %39 = vector.shape_cast %38 : vector<104xf32> to vector<104x1xf32>
    %40 = arith.subf %39, %21 : vector<104x1xf32>
    %41 = math.log %26 : vector<104x1xf32>
    %42 = arith.subf %40, %41 : vector<104x1xf32>
    %c0_26 = arith.constant 0 : index
    %c0_27 = arith.constant 0 : index
    %43 = vector.load %arg10[%c0_26, %c0_27] : memref<104x1xf32, #tpu.memory_space<vmem>>, vector<104x1xf32>
    tpu.vector_store %arg10[%c0_26, %c0_27], %42 {strides = array<i32>} : memref<104x1xf32, #tpu.memory_space<vmem>>, vector<104x1xf32>,
    return
  }
  func.func @transform_0(%arg0: i32) -> (i32, i32) {
    %c0_i32 = arith.constant 0 : i32
    %c0_i32_0 = arith.constant 0 : i32
    return %arg0, %c0_i32 : i32, i32
  }
  func.func @transform_1(%arg0: i32) -> (i32, i32) {
    %c0_i32 = arith.constant 0 : i32
    %c0_i32_0 = arith.constant 0 : i32
    return %arg0, %c0_i32 : i32, i32
  }
  func.func @transform_2(%arg0: i32) -> (i32, i32) {
    %c0_i32 = arith.constant 0 : i32
    %c0_i32_0 = arith.constant 0 : i32
    %c0_i32_1 = arith.constant 0 : i32
    return %c0_i32, %c0_i32_0 : i32, i32
  }
  func.func @transform_3(%arg0: i32) -> (i32, i32) {
    %c0_i32 = arith.constant 0 : i32
    %c0_i32_0 = arith.constant 0 : i32
    %c0_i32_1 = arith.constant 0 : i32
    return %c0_i32, %c0_i32_0 : i32, i32
  }
  func.func @transform_4(%arg0: i32) -> (i32, i32) {
    %c0_i32 = arith.constant 0 : i32
    %c0_i32_0 = arith.constant 0 : i32
    %c0_i32_1 = arith.constant 0 : i32
    return %c0_i32, %c0_i32_0 : i32, i32
  }
  func.func @transform_5(%arg0: i32) -> (i32, i32) {
    %c0_i32 = arith.constant 0 : i32
    %c0_i32_0 = arith.constant 0 : i32
    %c0_i32_1 = arith.constant 0 : i32
    return %c0_i32, %c0_i32_0 : i32, i32
  }
  func.func @transform_6(%arg0: i32) -> (i32, i32) {
    %c0_i32 = arith.constant 0 : i32
    %c0_i32_0 = arith.constant 0 : i32
    %c0_i32_1 = arith.constant 0 : i32
    return %c0_i32, %c0_i32_0 : i32, i32
  }
  func.func @transform_7(%arg0: i32) -> (i32, i32) {
    %c0_i32 = arith.constant 0 : i32
    %c0_i32_0 = arith.constant 0 : i32
    %c0_i32_1 = arith.constant 0 : i32
    return %c0_i32, %c0_i32_0 : i32, i32
  }
  func.func @transform_8(%arg0: i32) -> (i32, i32) {
    %c0_i32 = arith.constant 0 : i32
    %c0_i32_0 = arith.constant 0 : i32
    return %arg0, %c0_i32 : i32, i32
  }
  func.func @transform_9(%arg0: i32) -> (i32, i32) {
    %c0_i32 = arith.constant 0 : i32
    %c0_i32_0 = arith.constant 0 : i32
    return %arg0, %c0_i32 : i32, i32
  }
}

</mosaic_0001>

<bundles_post_ra>
// kernel: tpu_custom_call.1
= control target key start
LH: loop header
LB: loop body
LE: loop exit
PB: predicated region body
PF: predicated region fallthrough
CT: control target
= control target key end

     0   :  { %s3414_s0 = inlined_call_operand.vmem [shape: f32[200,16], index: 0, kind: input, shape index: {}]   ;;  %s3415_s1 = inlined_call_operand.vmem [shape: s32[200,1], index: 1, kind: input, shape index: {}]   ;;  %s3416_s2 = inlined_call_operand.vmem [shape: f32[16,64], index: 2, kind: input, shape index: {}]   ;;  %s3417_s3 = inlined_call_operand.vmem [shape: f32[1,64], index: 3, kind: input, shape index: {}]   ;;  %s3418_s4 = inlined_call_operand.vmem [shape: f32[64,64], index: 4, kind: input, shape index: {}]   ;;  %s3419_s5 = inlined_call_operand.vmem [shape: f32[1,64], index: 5, kind: input, shape index: {}]   ;;  %s3420_s6 = inlined_call_operand.vmem [shape: f32[64,6], index: 6, kind: input, shape index: {}]   ;;  %s3421_s7 = inlined_call_operand.vmem [shape: f32[1,6], index: 7, kind: input, shape index: {}]   ;;  %s3422_s8 = inlined_call_operand.vmem [shape: f32[200,6], index: 8, kind: output, shape index: {0}]   ;;  %s3423_s9 = inlined_call_operand.vmem [shape: f32[200,1], index: 9, kind: output, shape index: {1}]  }
   0x1   :  { %3424 = sst [smem:[#allocation4_spill]] %s3414_s0 }
   0x2   :  { %3425 = sst [smem:[#allocation5_spill]] %s3415_s1 }
   0x3   :  { %3426 = sst [smem:[#allocation6_spill]] %s3416_s2 }
   0x4   :  { %s2633_s30 = smov 0   ;;  %s2635_s10 = smov 0  }
   0x5   :  { %s2637_s11 = smov 0  }
   0x6 LB: > { %s2646_s12 = sadd.s32 4294967295, %s2513_s11   ;;  %s2648_s13 = sadd.s32 1, %s2513_s11   ;;  %s2513_s11 = sphi %s2637_s11, %s3439_s11   ;;  %s2509_s10 = sphi %s2635_s10, %s3438_s10   ;;  %s2505_s30 = sphi %s2633_s30, %s3437_s30  }
   0x7   : > { %s202_s14 = ssub.s32 %s2513_s11, %s2648_s13  ;;  %s205_s15 = sadd.s32 1, %s2509_s10 }
   0x8   : > { %p203_p0 = scmp.eq.s32.totalorder %s202_s14, 0  ;;  %p215_p1 = scmp.ne.s32.totalorder %s2509_s10, %s2505_s30 }
   0x9   : > { %p216_p2 = scmp.eq.s32.totalorder %s2646_s12, 1  ;;  %p1872_p3 = scmp.ge.s32.totalorder %s2513_s11, 1 }
   0xa   : > { %s2656_s16 = scalar_select %p203_p0, %s2509_s10, %s205_s15  }
   0xb   : > { %p2658_p4 = por %p216_p2, %p215_p1  ;;  %p318_p5 = scmp.lt.s32.totalorder %s2513_s11, 3 }
   0xd   : > { %p319_p6 = pnand %p1872_p3, %p318_p5 }
   0xe   : > { %s3428_s2 = sld [smem:[#allocation6_spill]] (!%p319_p6)  ;;  %s2669_s22 = smul.u32 (!%p319_p6), 13, %s2646_s12  ;;  %v2579_v2 = vmov (!%p319_p6), 0.0|0.0   ;;  %vm2580_vm0 = vmmov (!%p319_p6), 0   ;;  %v2581_v4 = vmov (!%p319_p6), 0.0   ;;  %v613_v5 = vld [vmem:[%s3418_s4] sm:$0xff] (!%p319_p6) }
   0xf   : > { %322 = sbr.rel (%p319_p6) target bundleno = 1169 (0x491), region = 52  ;;  %2151 = vmatprep.subr.bf16.mxu0 (!%p319_p6), %v2579_v2  ;;  %2002 = vmatprep.mubr.msk.f32.mxu0 (!%p319_p6), %vm2580_vm0, %v2581_v4  ;;  %v614_v6 = vld [vmem:[%s3418_s4 + $0x8] sm:$0xff] (!%p319_p6)  ;;  %vm430_vm1 = vcmask (!%p319_p6), 130048   ;;  %s3429_s0 = sld [smem:[#allocation4_spill]] (!%p319_p6)  ;;  %v615_v9 = vld [vmem:[%s3418_s4 + $0x10] sm:$0xff] (!%p319_p6)  ;;  %v616_v10 = vld [vmem:[%s3418_s4 + $0x18] sm:$0xff] (!%p319_p6) }
  0x10   : > { %p375_p7 = scmp.lt.s32.totalorder (!%p319_p6), %s2669_s22, 24  ;;  %2178 = vmatprep.subr.bf16.mxu1 (!%p319_p6), %v2579_v2  ;;  %2023 = vmatprep.mubr.msk.f32.mxu1 (!%p319_p6), %vm2580_vm0, %v2581_v4  ;;  %v2155_v8 = vpack.c.bf16 (!%p319_p6), %v614_v6, %v613_v5  ;;  %v2158_v14 = vpack.c.bf16 (!%p319_p6), %v616_v10, %v615_v9  ;;  %v617_v15 = vld [vmem:[%s3418_s4 + $0x20] sm:$0xff] (!%p319_p6)  ;;  %v618_v16 = vld [vmem:[%s3418_s4 + $0x28] sm:$0xff] (!%p319_p6)  ;;  %v619_v20 = vld [vmem:[%s3418_s4 + $0x30] sm:$0xff] (!%p319_p6)  ;;  %vm628_vm2 = vcmask (!%p319_p6), 523264   ;;  %s3430_s1 = sld [smem:[#allocation5_spill]] (!%p319_p6) }
  0x11   : > { %v2161_v19 = vpack.c.bf16 (!%p319_p6), %v618_v16, %v617_v15  ;;  %v620_v21 = vld [vmem:[%s3418_s4 + $0x38] sm:$0xff] (!%p319_p6)  ;;  %v811_v30 = vld [vmem:[%s3420_s6] sm:$0xff] (!%p319_p6)  ;;  %v812_v31 = vld [vmem:[%s3420_s6 + $0x8] sm:$0xff] (!%p319_p6)  ;;  %vm995_vm3 = vcmask (!%p319_p6), 48128   ;;  %s361_s15 = sand.u32 (!%p319_p6), 1, %s2505_s30  }
  0x12   : > { %v2164_v24 = vpack.c.bf16 (!%p319_p6), %v620_v21, %v619_v20  ;;  %v813_v32 = vld [vmem:[%s3420_s6 + $0x10] sm:$0xff] (!%p319_p6)  ;;  %v2167_v33 = vpack.c.bf16 (!%p319_p6), %v812_v31, %v811_v30  ;;  %v814_v34 = vld [vmem:[%s3420_s6 + $0x18] sm:$0xff] (!%p319_p6)  ;;  %v815_v36 = vld [vmem:[%s3420_s6 + $0x20] sm:$0xff] (!%p319_p6)  ;;  %s2180_s18 = smul.u32 (!%p319_p6), 104, %s361_s15 }
  0x13   : > { %v2170_v35 = vpack.c.bf16 (!%p319_p6), %v814_v34, %v813_v32  ;;  %v816_v37 = vld [vmem:[%s3420_s6 + $0x28] sm:$0xff] (!%p319_p6)  ;;  %v817_v39 = vld [vmem:[%s3420_s6 + $0x30] sm:$0xff] (!%p319_p6)  ;;  %v818_v40 = vld [vmem:[%s3420_s6 + $0x38] sm:$0xff] (!%p319_p6)  ;;  %v2582_v32 = vmov (!%p319_p6), 0  }
  0x14   : > { %v421_v0 = vld [vmem:[%s3428_s2] sm:$0xff] (!%p319_p6)  ;;  %v422_v1 = vld [vmem:[%s3428_s2 + $0x8] sm:$0xff] (!%p319_p6)  ;;  %v2173_v38 = vpack.c.bf16 (!%p319_p6), %v816_v37, %v815_v36  ;;  %v2176_v41 = vpack.c.bf16 (!%p319_p6), %v818_v40, %v817_v39  ;;  %2339 = vset.pattern.permute.xlu1 (!%p319_p6), %v2582_v32  ;;  %2340 = vset.pattern.permute.xlu0 (!%p319_p6), %v2582_v32  ;;  %s3163_s19 = scalar_lea.vmem (!%p319_p6), [#allocation2], %s2180_s18   ;;  %s3169_s30 = scalar_lea.vmem (!%p319_p6), [#allocation3], %s2180_s18  }
  0x15   : > { %v2152_v3 = vpack.c.bf16 (!%p319_p6), %v422_v1, %v421_v0  ;;  %v2800_v42 = vld [vmem:[%s3417_s3] ss:$0 sm:$0xff] (!%p319_p6) }
  0x16   : > { %s2679_s23 = scalar_select %p375_p7, %s2669_s22, 24 }
  0x17   : > { %2153 = vmatpush3.bf16.msra.mxu0 %v2152_v3  ;;  %2179 = vmatpush3.bf16.msra.mxu1 %v2152_v3  ;;  %s1362_s20 = ssub.s32 (%p2658_p4), 25, %s2669_s22  ;;  %s1939_s21 = smul.u32 (%p2658_p4), 104, %s2646_s12 }
  0x18   : > { %2154 = vmatprep.subr.bf16.mxu1 %v2579_v2  ;;  %2166 = vmatprep.subr.bf16.mxu0 %v2579_v2  ;;  %s1873_s28 = sshll.u32 %s2679_s23, 3  ;;  %p1363_p8 = scmp.lt.s32.totalorder (%p2658_p4), %s1362_s20, 13 }
  0x19   : > { %s2695_s14 = scalar_lea.vmem %s3429_s0, %s1873_s28  ;;  %s2857_s27 = scalar_lea.vmem %s3430_s1, %s1873_s28 }
  0x1a   : > { %v408_v7 = vld [vmem:[%s2695_s14] sm:$0xff]  ;;  %v409_v11 = vld [vmem:[%s2695_s14 + $0x8] sm:$0xff]  ;;  %v415_v12 = vld [vmem:[%s2695_s14 + $0x38] sm:$0xff]  ;;  %s3253_s25 = scalar_lea.vmem (%p2658_p4), %s3422_s8, %s1939_s21  }
  0x1b   : > { %2003 = vmatmul.mubr.msk.f32.vlgmr.msra.gmra.mrb[0].mxu0 %vm430_vm1, %v408_v7  ;;  %2024 = vmatmul.mubr.msk.f32.vlgmr.msra.gmra.mrb[0].mxu1 %vm430_vm1, %v415_v12  ;;  %v416_v13 = vld [vmem:[%s2695_s14 + $0x40] sm:$0xff]  ;;  %v410_v17 = vld [vmem:[%s2695_s14 + $0x10] sm:$0xff]  ;;  %v417_v18 = vld [vmem:[%s2695_s14 + $0x48] sm:$0xff] }
  0x1c   : > { %2005 = vmatprep.mubr.msk.f32.mxu0 %vm2580_vm0, %v2581_v4  ;;  %2026 = vmatprep.mubr.msk.f32.mxu1 %vm2580_vm0, %v2581_v4  ;;  %v411_v22 = vld [vmem:[%s2695_s14 + $0x18] sm:$0xff]  ;;  %v418_v23 = vld [vmem:[%s2695_s14 + $0x50] sm:$0xff]  ;;  %v412_v25 = vld [vmem:[%s2695_s14 + $0x20] sm:$0xff] }
  0x1d   : > { %2156 = vmatpush3.bf16.msra.mxu1 %v2155_v8  ;;  %v419_v26 = vld [vmem:[%s2695_s14 + $0x58] sm:$0xff]  ;;  %v413_v27 = vld [vmem:[%s2695_s14 + $0x28] sm:$0xff]  ;;  %v420_v28 = vld [vmem:[%s2695_s14 + $0x60] sm:$0xff]  ;;  %2168 = vmatpush3.bf16.msra.mxu0 %v2167_v33 }
  0x1e   : > { %2157 = vmatprep.subr.bf16.mxu1 %v2579_v2  ;;  %v414_v29 = vld [vmem:[%s2695_s14 + $0x30] sm:$0xff]  ;;  %2169 = vmatprep.subr.bf16.mxu0 %v2579_v2  ;;  %v1167_v33 = vld [vmem:[%s2857_s27] sm:$0xff]  ;;  %v1168_v34 = vld [vmem:[%s2857_s27 + $0x8] sm:$0xff] }
  0x1f   : > { %2006 = vmatmul.mubr.msk.f32.gmra.mrb[2].mxu0 %vm430_vm1, %v409_v11  ;;  %2027 = vmatmul.mubr.msk.f32.gmra.mrb[2].mxu1 %vm430_vm1, %v416_v13  ;;  %v1177_v36 = vld [vmem:[%s2857_s27 + $0x50] sm:$0xff]  ;;  %v1170_v37 = vld [vmem:[%s2857_s27 + $0x18] sm:$0xff]  ;;  %v1172_v39 = vld [vmem:[%s2857_s27 + $0x28] sm:$0xff] }
  0x20   : > { %2008 = vmatprep.mubr.msk.f32.mxu0 %vm2580_vm0, %v2581_v4  ;;  %2029 = vmatprep.mubr.msk.f32.mxu1 %vm2580_vm0, %v2581_v4  ;;  %v1173_v40 = vld [vmem:[%s2857_s27 + $0x30] sm:$0xff] }
  0x21   : > { %2159 = vmatpush3.bf16.msra.mxu1 %v2158_v14  ;;  %2171 = vmatpush3.bf16.msra.mxu0 %v2170_v35  ;;  %v1169_v35 = vld [vmem:[%s2857_s27 + $0x10] sm:$0xff] }
  0x22   : > { %2160 = vmatprep.subr.bf16.mxu1 %v2579_v2  ;;  %2172 = vmatprep.subr.bf16.mxu0 %v2579_v2 }
  0x23   : > { %2009 = vmatmul.mubr.msk.f32.gmra.mrb[4].mxu0 %vm430_vm1, %v410_v17  ;;  %2030 = vmatmul.mubr.msk.f32.gmra.mrb[4].mxu1 %vm430_vm1, %v417_v18 }
  0x24   : > { %2011 = vmatprep.mubr.msk.f32.mxu0 %vm2580_vm0, %v2581_v4  ;;  %2032 = vmatprep.mubr.msk.f32.mxu1 %vm2580_vm0, %v2581_v4 }
  0x25   : > { %2162 = vmatpush3.bf16.msra.mxu1 %v2161_v19  ;;  %2174 = vmatpush3.bf16.msra.mxu0 %v2173_v38  ;;  %v1171_v38 = vld [vmem:[%s2857_s27 + $0x20] sm:$0xff] }
  0x26   : > { %2163 = vmatprep.subr.bf16.mxu1 %v2579_v2  ;;  %2175 = vmatprep.subr.bf16.mxu0 %v2579_v2 }
  0x27   : > { %2012 = vmatmul.mubr.msk.f32.gmra.mrb[6].mxu0 %vm430_vm1, %v411_v22  ;;  %2033 = vmatmul.mubr.msk.f32.gmra.mrb[6].mxu1 %vm430_vm1, %v418_v23 }
  0x28   : > { %2014 = vmatprep.mubr.msk.f32.mxu0 %vm2580_vm0, %v2581_v4  ;;  %2035 = vmatprep.mubr.msk.f32.mxu1 %vm2580_vm0, %v2581_v4 }
  0x29   : > { %2165 = vmatpush3.bf16.msra.mxu1 %v2164_v24  ;;  %2177 = vmatpush3.bf16.msra.mxu0 %v2176_v41  ;;  %v1174_v41 = vld [vmem:[%s2857_s27 + $0x38] sm:$0xff] }
  0x2a   : > { %1181 = vperm.xlu1 %2339, %v1167_v33   ;;  %1184 = vperm.xlu0 %2340, %v1168_v34   ;;  %v2928_v34 = vld [vmem:[%s3421_s7] ss:$0 sm:$0xff] }
  0x2b   : > { %2015 = vmatmul.mubr.msk.f32.gmra.mrb[8].mxu0 %vm430_vm1, %v412_v25  ;;  %2036 = vmatmul.mubr.msk.f32.gmra.mrb[8].mxu1 %vm430_vm1, %v419_v26 }
  0x2c   : > { %2017 = vmatprep.mubr.msk.f32.mxu0 %vm2580_vm0, %v2581_v4  ;;  %2038 = vmatprep.mubr.msk.f32.mxu1 %vm2580_vm0, %v2581_v4 }
  0x2e   : > { %1187 = vperm.xlu1 %2339, %v1169_v35   ;;  %1211 = vperm.xlu0 %2340, %v1177_v36  }
  0x2f   : > { %2018 = vmatmul.mubr.msk.f32.gmra.mrb[10].mxu0 %vm430_vm1, %v413_v27  ;;  %2039 = vmatmul.mubr.msk.f32.gmra.mrb[10].mxu1 %vm430_vm1, %v420_v28 }
  0x30   : > { %2020 = vmatprep.mubr.msk.f32.mxu0 %vm2580_vm0, %v2581_v4  ;;  %2057 = vmatprep.mubr.msk.f32.mxu1 %vm2580_vm0, %v2581_v4 }
  0x32   : > { %1190 = vperm.xlu1 %2339, %v1170_v37  }
  0x33   : > { %2021 = vmatmul.mubr.msk.f32.gmra.mrb[12].mxu0 %vm430_vm1, %v414_v29  ;;  %vm1336_vm1 = vcmask 7168  }
  0x34   : > { %2112 = vmatprep.mubr.msk.f32.mxu0 %vm2580_vm0, %v2581_v4 }
  0x36   : > { %1193 = vperm.xlu1 %2339, %v1171_v38  }
  0x3a   : > { %1196 = vperm.xlu1 %2339, %v1172_v39  }
  0x3e   : > { %1199 = vperm.xlu1 %2339, %v1173_v40  }
  0x42   : > { %1202 = vperm.xlu1 %2339, %v1174_v41  }
  0xee   : > { %v536_v43 = vpop.f32.mrb[0].mxu0  ;;  %v571_v46 = vpop.f32.mrb[0].mxu1 }
  0xef   : > { %v537_v44 = vadd.f32 %v2800_v42, %v536_v43  ;;  %v2004_v45 = vpop.f32.mrb[1].mxu0  ;;  %v2025_v48 = vpop.f32.mrb[1].mxu1  ;;  %v572_v19 = vadd.f32 %v2800_v42, %v571_v46  ;;  %v1176_v43 = vld [vmem:[%s2857_s27 + $0x48] sm:$0xff] }
  0xf1   : > { %v600_v47 = vmax.f32 %v537_v44, 0.0  ;;  %v607_v21 = vmax.f32 %v572_v19, 0.0  ;;  %v2873_v44 = vld [vmem:[%s3419_s5] ss:$0 sm:$0xff] }
  0xf2   : > { %v541_v49 = vpop.f32.mrb[2].mxu0  ;;  %v576_v52 = vpop.f32.mrb[2].mxu1 }
  0xf3   : > { %v542_v50 = vadd.f32 %v2800_v42, %v541_v49  ;;  %v2007_v51 = vpop.f32.mrb[3].mxu0  ;;  %2058 = vmatmul.mubr.msk.f32.vlgmr.msra.gmra.mrb[12].mxu1 %vm628_vm2, %v600_v47  ;;  %v2028_v54 = vpop.f32.mrb[3].mxu1  ;;  %v577_v22 = vadd.f32 %v2800_v42, %v576_v52 }
  0xf4   : > { %2060 = vmatprep.mubr.msk.f32.mxu1 %vm2580_vm0, %v2581_v4 }
  0xf5   : > { %v601_v53 = vmax.f32 %v542_v50, 0.0  ;;  %v608_v23 = vmax.f32 %v577_v22, 0.0 }
  0xf6   : > { %v546_v55 = vpop.f32.mrb[4].mxu0  ;;  %v581_v58 = vpop.f32.mrb[4].mxu1 }
  0xf7   : > { %v547_v56 = vadd.f32 %v2800_v42, %v546_v55  ;;  %v2010_v57 = vpop.f32.mrb[5].mxu0  ;;  %2061 = vmatmul.mubr.msk.f32.gmra.mrb[14].mxu1 %vm628_vm2, %v601_v53  ;;  %v2031_v60 = vpop.f32.mrb[5].mxu1  ;;  %v582_v24 = vadd.f32 %v2800_v42, %v581_v58 }
  0xf8   : > { %2063 = vmatprep.mubr.msk.f32.mxu1 %vm2580_vm0, %v2581_v4 }
  0xf9   : > { %v602_v59 = vmax.f32 %v547_v56, 0.0  ;;  %v609_v25 = vmax.f32 %v582_v24, 0.0 }
  0xfa   : > { %v551_v61 = vpop.f32.mrb[6].mxu0  ;;  %v586_v0 = vpop.f32.mrb[6].mxu1 }
  0xfb   : > { %v552_v62 = vadd.f32 %v2800_v42, %v551_v61  ;;  %v2013_v63 = vpop.f32.mrb[7].mxu0  ;;  %2064 = vmatmul.mubr.msk.f32.gmra.mrb[16].mxu1 %vm628_vm2, %v602_v59  ;;  %v2034_v2 = vpop.f32.mrb[7].mxu1  ;;  %v587_v26 = vadd.f32 %v2800_v42, %v586_v0 }
  0xfc   : > { %2066 = vmatprep.mubr.msk.f32.mxu1 %vm2580_vm0, %v2581_v4 }
  0xfd   : > { %v603_v1 = vmax.f32 %v552_v62, 0.0  ;;  %v610_v27 = vmax.f32 %v587_v26, 0.0 }
  0xfe   : > { %v556_v3 = vpop.f32.mrb[8].mxu0  ;;  %v591_v7 = vpop.f32.mrb[8].mxu1 }
  0xff   : > { %v557_v5 = vadd.f32 %v2800_v42, %v556_v3  ;;  %v2016_v6 = vpop.f32.mrb[9].mxu0  ;;  %2067 = vmatmul.mubr.msk.f32.gmra.mrb[18].mxu1 %vm628_vm2, %v603_v1  ;;  %v2037_v9 = vpop.f32.mrb[9].mxu1  ;;  %v592_v28 = vadd.f32 %v2800_v42, %v591_v7 }
 0x100   : > { %2069 = vmatprep.mubr.msk.f32.mxu1 %vm2580_vm0, %v2581_v4 }
 0x101   : > { %v604_v8 = vmax.f32 %v557_v5, 0.0  ;;  %v611_v29 = vmax.f32 %v592_v28, 0.0 }
 0x102   : > { %v561_v10 = vpop.f32.mrb[10].mxu0  ;;  %v596_v13 = vpop.f32.mrb[10].mxu1 }
 0x103   : > { %v562_v11 = vadd.f32 %v2800_v42, %v561_v10  ;;  %v2019_v12 = vpop.f32.mrb[11].mxu0  ;;  %2070 = vmatmul.mubr.msk.f32.gmra.mrb[20].mxu1 %vm628_vm2, %v604_v8  ;;  %v2040_v15 = vpop.f32.mrb[11].mxu1  ;;  %v597_v30 = vadd.f32 %v2800_v42, %v596_v13 }
 0x104   : > { %2072 = vmatprep.mubr.msk.f32.mxu1 %vm2580_vm0, %v2581_v4 }
 0x105   : > { %v605_v14 = vmax.f32 %v562_v11, 0.0  ;;  %v612_v31 = vmax.f32 %v597_v30, 0.0 }
 0x106   : > { %v566_v16 = vpop.f32.mrb[12].mxu0 }
 0x107   : > { %v567_v17 = vadd.f32 %v2800_v42, %v566_v16  ;;  %v2022_v18 = vpop.f32.mrb[13].mxu0  ;;  %2073 = vmatmul.mubr.msk.f32.gmra.mrb[22].mxu1 %vm628_vm2, %v605_v14  ;;  %v1175_v42 = vld [vmem:[%s2857_s27 + $0x40] sm:$0xff] }
 0x108   : > { %2075 = vmatprep.mubr.msk.f32.mxu1 %vm2580_vm0, %v2581_v4  ;;  %1205 = vperm.xlu1 %2339, %v1175_v42  }
 0x109   : > { %v606_v20 = vmax.f32 %v567_v17, 0.0 }
 0x10b   : > { %2076 = vmatmul.mubr.msk.f32.gmra.mrb[24].mxu1 %vm628_vm2, %v606_v20 }
 0x10c   : > { %2078 = vmatprep.mubr.msk.f32.mxu1 %vm2580_vm0, %v2581_v4  ;;  %1208 = vperm.xlu1 %2339, %v1176_v43  }
 0x10f   : > { %2079 = vmatmul.mubr.msk.f32.gmra.mrb[26].mxu1 %vm628_vm2, %v607_v21 }
 0x110   : > { %2081 = vmatprep.mubr.msk.f32.mxu1 %vm2580_vm0, %v2581_v4 }
 0x113   : > { %2082 = vmatmul.mubr.msk.f32.gmra.mrb[28].mxu1 %vm628_vm2, %v608_v23 }
 0x114   : > { %2084 = vmatprep.mubr.msk.f32.mxu1 %vm2580_vm0, %v2581_v4 }
 0x117   : > { %2085 = vmatmul.mubr.msk.f32.gmra.mrb[30].mxu1 %vm628_vm2, %v609_v25 }
 0x118   : > { %2087 = vmatprep.mubr.msk.f32.mxu1 %vm2580_vm0, %v2581_v4 }
 0x11b   : > { %2088 = vmatmul.mubr.msk.f32.gmra.mrb[32].mxu1 %vm628_vm2, %v610_v27 }
 0x11c   : > { %2090 = vmatprep.mubr.msk.f32.mxu1 %vm2580_vm0, %v2581_v4 }
 0x11f   : > { %2091 = vmatmul.mubr.msk.f32.gmra.mrb[34].mxu1 %vm628_vm2, %v611_v29 }
 0x120   : > { %2093 = vmatprep.mubr.msk.f32.mxu1 %vm2580_vm0, %v2581_v4 }
 0x123   : > { %2094 = vmatmul.mubr.msk.f32.gmra.mrb[36].mxu1 %vm628_vm2, %v612_v31 }
 0x1c6   : > { %v734_v45 = vpop.f32.mrb[12].mxu1 }
 0x1c7   : > { %v735_v46 = vadd.f32 %v2873_v44, %v734_v45  ;;  %v2059_v47 = vpop.f32.mrb[13].mxu1 }
 0x1c9   : > { %v798_v48 = vmax.f32 %v735_v46, 0.0 }
 0x1ca   : > { %v739_v49 = vpop.f32.mrb[14].mxu1 }
 0x1cb   : > { %v740_v50 = vadd.f32 %v2873_v44, %v739_v49  ;;  %v2062_v51 = vpop.f32.mrb[15].mxu1  ;;  %2113 = vmatmul.mubr.msk.f32.vlgmr.msra.gmra.mrb[14].mxu0 %vm628_vm2, %v798_v48 }
 0x1cc   : > { %2115 = vmatprep.mubr.msk.f32.mxu0 %vm2580_vm0, %v2581_v4 }
 0x1cd   : > { %v799_v52 = vmax.f32 %v740_v50, 0.0 }
 0x1ce   : > { %v744_v53 = vpop.f32.mrb[16].mxu1 }
 0x1cf   : > { %v745_v54 = vadd.f32 %v2873_v44, %v744_v53  ;;  %v2065_v55 = vpop.f32.mrb[17].mxu1  ;;  %2116 = vmatmul.mubr.msk.f32.gmra.mrb[16].mxu0 %vm628_vm2, %v799_v52 }
 0x1d0   : > { %2118 = vmatprep.mubr.msk.f32.mxu0 %vm2580_vm0, %v2581_v4 }
 0x1d1   : > { %v800_v56 = vmax.f32 %v745_v54, 0.0 }
 0x1d2   : > { %v749_v57 = vpop.f32.mrb[18].mxu1 }
 0x1d3   : > { %v750_v58 = vadd.f32 %v2873_v44, %v749_v57  ;;  %v2068_v59 = vpop.f32.mrb[19].mxu1  ;;  %2119 = vmatmul.mubr.msk.f32.gmra.mrb[18].mxu0 %vm628_vm2, %v800_v56 }
 0x1d4   : > { %2121 = vmatprep.mubr.msk.f32.mxu0 %vm2580_vm0, %v2581_v4 }
 0x1d5   : > { %v801_v60 = vmax.f32 %v750_v58, 0.0 }
 0x1d6   : > { %v754_v61 = vpop.f32.mrb[20].mxu1 }
 0x1d7   : > { %v755_v62 = vadd.f32 %v2873_v44, %v754_v61  ;;  %v2071_v63 = vpop.f32.mrb[21].mxu1  ;;  %2122 = vmatmul.mubr.msk.f32.gmra.mrb[20].mxu0 %vm628_vm2, %v801_v60 }
 0x1d8   : > { %2124 = vmatprep.mubr.msk.f32.mxu0 %vm2580_vm0, %v2581_v4 }
 0x1d9   : > { %v802_v0 = vmax.f32 %v755_v62, 0.0 }
 0x1da   : > { %v759_v1 = vpop.f32.mrb[22].mxu1 }
 0x1db   : > { %v760_v2 = vadd.f32 %v2873_v44, %v759_v1  ;;  %v2074_v3 = vpop.f32.mrb[23].mxu1  ;;  %2125 = vmatmul.mubr.msk.f32.gmra.mrb[22].mxu0 %vm628_vm2, %v802_v0 }
 0x1dc   : > { %2127 = vmatprep.mubr.msk.f32.mxu0 %vm2580_vm0, %v2581_v4 }
 0x1dd   : > { %v803_v5 = vmax.f32 %v760_v2, 0.0 }
 0x1de   : > { %v764_v6 = vpop.f32.mrb[24].mxu1 }
 0x1df   : > { %v765_v7 = vadd.f32 %v2873_v44, %v764_v6  ;;  %v2077_v8 = vpop.f32.mrb[25].mxu1  ;;  %2128 = vmatmul.mubr.msk.f32.gmra.mrb[24].mxu0 %vm628_vm2, %v803_v5 }
 0x1e0   : > { %2130 = vmatprep.mubr.msk.f32.mxu0 %vm2580_vm0, %v2581_v4 }
 0x1e1   : > { %v804_v9 = vmax.f32 %v765_v7, 0.0 }
 0x1e2   : > { %v769_v10 = vpop.f32.mrb[26].mxu1 }
 0x1e3   : > { %v770_v11 = vadd.f32 %v2873_v44, %v769_v10  ;;  %v2080_v12 = vpop.f32.mrb[27].mxu1  ;;  %2131 = vmatmul.mubr.msk.f32.gmra.mrb[26].mxu0 %vm628_vm2, %v804_v9 }
 0x1e4   : > { %2133 = vmatprep.mubr.msk.f32.mxu0 %vm2580_vm0, %v2581_v4 }
 0x1e5   : > { %v805_v13 = vmax.f32 %v770_v11, 0.0 }
 0x1e6   : > { %v774_v14 = vpop.f32.mrb[28].mxu1 }
 0x1e7   : > { %v775_v15 = vadd.f32 %v2873_v44, %v774_v14  ;;  %v2083_v16 = vpop.f32.mrb[29].mxu1  ;;  %2134 = vmatmul.mubr.msk.f32.gmra.mrb[28].mxu0 %vm628_vm2, %v805_v13 }
 0x1e8   : > { %2136 = vmatprep.mubr.msk.f32.mxu0 %vm2580_vm0, %v2581_v4 }
 0x1e9   : > { %v806_v17 = vmax.f32 %v775_v15, 0.0 }
 0x1ea   : > { %v779_v18 = vpop.f32.mrb[30].mxu1 }
 0x1eb   : > { %v780_v19 = vadd.f32 %v2873_v44, %v779_v18  ;;  %v2086_v20 = vpop.f32.mrb[31].mxu1  ;;  %2137 = vmatmul.mubr.msk.f32.gmra.mrb[30].mxu0 %vm628_vm2, %v806_v17 }
 0x1ec   : > { %2139 = vmatprep.mubr.msk.f32.mxu0 %vm2580_vm0, %v2581_v4 }
 0x1ed   : > { %v807_v21 = vmax.f32 %v780_v19, 0.0 }
 0x1ee   : > { %v784_v22 = vpop.f32.mrb[32].mxu1 }
 0x1ef   : > { %v785_v23 = vadd.f32 %v2873_v44, %v784_v22  ;;  %v2089_v24 = vpop.f32.mrb[33].mxu1  ;;  %2140 = vmatmul.mubr.msk.f32.gmra.mrb[32].mxu0 %vm628_vm2, %v807_v21 }
 0x1f0   : > { %2142 = vmatprep.mubr.msk.f32.mxu0 %vm2580_vm0, %v2581_v4  ;;  %v1179_v24 = vld [vmem:[%s2857_s27 + $0x60] sm:$0xff] }
 0x1f1   : > { %v808_v25 = vmax.f32 %v785_v23, 0.0  ;;  %v1178_v23 = vld [vmem:[%s2857_s27 + $0x58] sm:$0xff] }
 0x1f2   : > { %v789_v26 = vpop.f32.mrb[34].mxu1 }
 0x1f3   : > { %v790_v27 = vadd.f32 %v2873_v44, %v789_v26  ;;  %v2092_v28 = vpop.f32.mrb[35].mxu1  ;;  %2143 = vmatmul.mubr.msk.f32.gmra.mrb[34].mxu0 %vm628_vm2, %v808_v25  ;;  %v1182_v25 = vpop.permute.xlu1 %1181 }
 0x1f4   : > { %2145 = vmatprep.mubr.msk.f32.mxu0 %vm2580_vm0, %v2581_v4  ;;  %v1165_v28 = vlaneseq }
 0x1f5   : > { %v809_v29 = vmax.f32 %v790_v27, 0.0 }
 0x1f6   : > { %v794_v30 = vpop.f32.mrb[36].mxu1 }
 0x1f7   : > { %v795_v31 = vadd.f32 %v2873_v44, %v794_v30  ;;  %v2095_v32 = vpop.f32.mrb[37].mxu1  ;;  %2146 = vmatmul.mubr.msk.f32.gmra.mrb[36].mxu0 %vm628_vm2, %v809_v29  ;;  %v1188_v26 = vpop.permute.xlu1 %1187  ;;  %v2997_v29 = vand.u32 127, %v1165_v28 }
 0x1f8   : > { %2148 = vmatprep.mubr.msk.f32.mxu0 %vm2580_vm0, %v2581_v4 }
 0x1f9   : > { %v810_v33 = vmax.f32 %v795_v31, 0.0  ;;  %vm1219_vm4 = vcmp.eq.s32.totalorder %v2997_v29, %v1182_v25  ;;  %v1185_v31 = vpop.permute.xlu0 %1184  ;;  %vm1221_vm6 = vcmp.eq.s32.totalorder %v2997_v29, %v1188_v26 }
 0x1fa   : > { %vm1220_vm5 = vcmp.eq.s32.totalorder %v2997_v29, %v1185_v31 }
 0x1fb   : > { %2149 = vmatmul.mubr.msk.f32.gmra.mrb[38].mxu0 %vm628_vm2, %v810_v33  ;;  %v1191_v27 = vpop.permute.xlu1 %1190 }
 0x1fc   : > { %vm1222_vm7 = vcmp.eq.s32.totalorder %v2997_v29, %v1191_v27 }
 0x1ff   : > { %v1194_v30 = vpop.permute.xlu1 %1193 }
 0x200   : > { %vm1223_vm8 = vcmp.eq.s32.totalorder %v2997_v29, %v1194_v30 }
 0x203   : > { %v1197_v32 = vpop.permute.xlu1 %1196 }
 0x204   : > { %vm1224_vm9 = vcmp.eq.s32.totalorder %v2997_v29, %v1197_v32 }
 0x29e   : > { %v931_v35 = vpop.f32.mrb[14].mxu0 }
 0x29f   : > { %v2931_v36 = vadd.f32 %v2928_v34, %v931_v35  ;;  %v2114_v37 = vpop.f32.mrb[15].mxu0 }
 0x2a1   : > { %v996_v38 = vsel %vm995_vm3, %v2931_v36, -inf  ;;  %v1232_v33 = vsel %vm1219_vm4, %v2931_v36, 0.0 }
 0x2a2   : > { %997 = vmax.xlane.f32.xlu0 %v996_v38  ;;  %v936_v39 = vpop.f32.mrb[16].mxu0  ;;  %v1200_v38 = vpop.permute.xlu1 %1199 }
 0x2a3   : > { %v2936_v4 = vadd.f32 %v2928_v34, %v936_v39  ;;  %v2117_v40 = vpop.f32.mrb[17].mxu0  ;;  %vm1225_vm10 = vcmp.eq.s32.totalorder %v2997_v29, %v1200_v38 }
 0x2a5   : > { %v999_v41 = vsel %vm995_vm3, %v2936_v4, -inf  ;;  %v1233_v37 = vsel %vm1220_vm5, %v2936_v4, 0.0 }
 0x2a6   : > { %1000 = vmax.xlane.f32.xlu0 %v999_v41  ;;  %v941_v42 = vpop.f32.mrb[18].mxu0  ;;  %v1248_v40 = vsel %vm995_vm3, %v1233_v37, 0.0 }
 0x2a7   : > { %v2941_v43 = vadd.f32 %v2928_v34, %v941_v42  ;;  %v2120_v44 = vpop.f32.mrb[19].mxu0 }
 0x2a9   : > { %v1002_v45 = vsel %vm995_vm3, %v2941_v43, -inf  ;;  %v1234_v35 = vsel %vm1221_vm6, %v2941_v43, 0.0 }
 0x2aa   : > { %1003 = vmax.xlane.f32.xlu1 %v1002_v45  ;;  %v946_v46 = vpop.f32.mrb[20].mxu0  ;;  %v1251_v39 = vsel %vm995_vm3, %v1234_v35, 0.0 }
 0x2ab   : > { %v2946_v47 = vadd.f32 %v2928_v34, %v946_v46  ;;  %v2123_v48 = vpop.f32.mrb[21].mxu0 }
 0x2ad   : > { %v1005_v49 = vsel %vm995_vm3, %v2946_v47, -inf  ;;  %v1235_v42 = vsel %vm1222_vm7, %v2946_v47, 0.0 }
 0x2ae   : > { %1006 = vmax.xlane.f32.xlu1 %v1005_v49  ;;  %v951_v50 = vpop.f32.mrb[22].mxu0  ;;  %v1254_v45 = vsel %vm995_vm3, %v1235_v42, 0.0 }
 0x2af   : > { %v2951_v51 = vadd.f32 %v2928_v34, %v951_v50  ;;  %v2126_v52 = vpop.f32.mrb[23].mxu0 }
 0x2b0   : > { %v3020_v52 = vpop.permute.xlu1 %1202 }
 0x2b1   : > { %v1008_v53 = vsel %vm995_vm3, %v2951_v51, -inf  ;;  %v1236_v41 = vsel %vm1223_vm8, %v2951_v51, 0.0  ;;  %vm1226_vm12 = vcmp.eq.s32.totalorder %v2997_v29, %v3020_v52 }
 0x2b2   : > { %1009 = vmax.xlane.f32.xlu0 %v1008_v53  ;;  %v956_v54 = vpop.f32.mrb[24].mxu0  ;;  %v1257_v44 = vsel %vm995_vm3, %v1236_v41, 0.0  ;;  %v3022_v53 = vpop.permute.xlu0 %1211 }
 0x2b3   : > { %v2956_v55 = vadd.f32 %v2928_v34, %v956_v54  ;;  %v2129_v56 = vpop.f32.mrb[25].mxu0  ;;  %vm1229_vm13 = vcmp.eq.s32.totalorder %v2997_v29, %v3022_v53 }
 0x2b4   : > { %v3024_v54 = vpop.permute.xlu1 %1205 }
 0x2b5   : > { %v1011_v57 = vsel %vm995_vm3, %v2956_v55, -inf  ;;  %v1237_v48 = vsel %vm1224_vm9, %v2956_v55, 0.0  ;;  %vm1227_vm11 = vcmp.eq.s32.totalorder %v2997_v29, %v3024_v54 }
 0x2b6   : > { %1012 = vmax.xlane.f32.xlu1 %v1011_v57  ;;  %v961_v58 = vpop.f32.mrb[26].mxu0  ;;  %v1260_v50 = vsel %vm995_vm3, %v1237_v48, 0.0 }
 0x2b7   : > { %v2961_v59 = vadd.f32 %v2928_v34, %v961_v58  ;;  %v2132_v60 = vpop.f32.mrb[27].mxu0 }
 0x2b8   : > { %v3030_v60 = vpop.permute.xlu1 %1208 }
 0x2b9   : > { %v1014_v61 = vsel %vm995_vm3, %v2961_v59, -inf  ;;  %v1238_v46 = vsel %vm1225_vm10, %v2961_v59, 0.0  ;;  %vm1228_vm14 = vcmp.eq.s32.totalorder %v2997_v29, %v3030_v60 }
 0x2ba   : > { %1015 = vmax.xlane.f32.xlu0 %v1014_v61  ;;  %v966_v62 = vpop.f32.mrb[28].mxu0  ;;  %v1263_v49 = vsel %vm995_vm3, %v1238_v46, 0.0 }
 0x2bb   : > { %v2966_v63 = vadd.f32 %v2928_v34, %v966_v62  ;;  %v2135_v0 = vpop.f32.mrb[29].mxu0 }
 0x2bd   : > { %v1017_v1 = vsel %vm995_vm3, %v2966_v63, -inf }
 0x2be   : > { %1018 = vmax.xlane.f32.xlu1 %v1017_v1  ;;  %v971_v2 = vpop.f32.mrb[30].mxu0 }
 0x2bf   : > { %v2971_v3 = vadd.f32 %v2928_v34, %v971_v2  ;;  %v2138_v5 = vpop.f32.mrb[31].mxu0 }
 0x2c1   : > { %v1020_v6 = vsel %vm995_vm3, %v2971_v3, -inf }
 0x2c2   : > { %1021 = vmax.xlane.f32.xlu0 %v1020_v6  ;;  %v976_v7 = vpop.f32.mrb[32].mxu0 }
 0x2c3   : > { %v2976_v8 = vadd.f32 %v2928_v34, %v976_v7  ;;  %v2141_v9 = vpop.f32.mrb[33].mxu0 }
 0x2c5   : > { %v1023_v10 = vsel %vm995_vm3, %v2976_v8, -inf }
 0x2c6   : > { %1024 = vmax.xlane.f32.xlu1 %v1023_v10  ;;  %v981_v11 = vpop.f32.mrb[34].mxu0 }
 0x2c7   : > { %v2981_v12 = vadd.f32 %v2928_v34, %v981_v11  ;;  %v2144_v13 = vpop.f32.mrb[35].mxu0 }
 0x2c9   : > { %v1026_v14 = vsel %vm995_vm3, %v2981_v12, -inf }
 0x2ca   : > { %1027 = vmax.xlane.f32.xlu0 %v1026_v14  ;;  %v986_v15 = vpop.f32.mrb[36].mxu0 }
 0x2cb   : > { %v2986_v16 = vadd.f32 %v2928_v34, %v986_v15  ;;  %v2147_v17 = vpop.f32.mrb[37].mxu0 }
 0x2cd   : > { %v1029_v18 = vsel %vm995_vm3, %v2986_v16, -inf }
 0x2ce   : > { %1030 = vmax.xlane.f32.xlu1 %v1029_v18  ;;  %v991_v19 = vpop.f32.mrb[38].mxu0 }
 0x2cf   : > { %v2991_v20 = vadd.f32 %v2928_v34, %v991_v19  ;;  %v2150_v21 = vpop.f32.mrb[39].mxu0  ;;  %v1245_v34 = vsel %vm995_vm3, %v1232_v33, 0.0 }
 0x2d1   : > { %v1032_v22 = vsel %vm995_vm3, %v2991_v20, -inf }
 0x2d2   : > { %1033 = vmax.xlane.f32.xlu0 %v1032_v22 }
 0x2df   : > { %1214 = vperm.xlu1 %2339, %v1178_v23  }
 0x2e8   : > { %1217 = vperm.xlu0 %2340, %v1179_v24  }
 0x303   : > { %1246 = vadd.xlane.f32.xlu1 %v1245_v34 }
 0x307   : > { %1252 = vadd.xlane.f32.xlu1 %v1251_v39  ;;  %1249 = vadd.xlane.f32.xlu0 %v1248_v40 }
 0x30b   : > { %1258 = vadd.xlane.f32.xlu1 %v1257_v44  ;;  %1255 = vadd.xlane.f32.xlu0 %v1254_v45 }
 0x30f   : > { %1264 = vadd.xlane.f32.xlu1 %v1263_v49  ;;  %1261 = vadd.xlane.f32.xlu0 %v1260_v50 }
 0x32f   : > { %v3026_v56 = vpop.xlane.xlu0 %997 }
 0x330   : > { %v1035_v57 = vsub.f32 %v2931_v36, %v3026_v56 }
 0x332   : > { %v1048_v58 = vmul.f32 1.442695, %v1035_v57 }
 0x333   : > { %v3032_v61 = vpop.xlane.xlu0 %1000 }
 0x334   : > { %2341 = vpow2.f32 %v1048_v58  ;;  %v1036_v62 = vsub.f32 %v2936_v4, %v3032_v61 }
 0x336   : > { %v1050_v0 = vmul.f32 1.442695, %v1036_v62 }
 0x337   : > { %v3036_v1 = vpop.xlane.xlu1 %1003 }
 0x338   : > { %2343 = vpow2.f32 %v1050_v0  ;;  %v1037_v2 = vsub.f32 %v2941_v43, %v3036_v1 }
 0x33a   : > { %v1052_v5 = vmul.f32 1.442695, %v1037_v2 }
 0x33b   : > { %v3040_v6 = vpop.xlane.xlu1 %1006 }
 0x33c   : > { %2345 = vpow2.f32 %v1052_v5  ;;  %v1038_v36 = vsub.f32 %v2946_v47, %v3040_v6 }
 0x33e   : > { %v3044_v7 = vpop.eup %2341  ;;  %v1054_v9 = vmul.f32 1.442695, %v1038_v36 }
 0x33f   : > { %v3046_v10 = vpop.xlane.xlu0 %1009  ;;  %v1074_v4 = vsel %vm995_vm3, %v3044_v7, 0.0 }
 0x340   : > { %2347 = vpow2.f32 %v1054_v9  ;;  %v1039_v11 = vsub.f32 %v2951_v51, %v3046_v10  ;;  %1075 = vadd.xlane.f32.xlu1 %v1074_v4 }
 0x342   : > { %v3052_v43 = vpop.eup %2343  ;;  %v1056_v13 = vmul.f32 1.442695, %v1039_v11 }
 0x343   : > { %v3054_v14 = vpop.xlane.xlu1 %1012  ;;  %v1077_v47 = vsel %vm995_vm3, %v3052_v43, 0.0 }
 0x344   : > { %2349 = vpow2.f32 %v1056_v13  ;;  %v1040_v15 = vsub.f32 %v2956_v55, %v3054_v14  ;;  %1078 = vadd.xlane.f32.xlu0 %v1077_v47  ;;  %v1240_v13 = vsel %vm1227_vm11, %v2971_v3, 0.0 }
 0x346   : > { %v3060_v17 = vpop.eup %2345  ;;  %v1058_v18 = vmul.f32 1.442695, %v1040_v15 }
 0x347   : > { %v3062_v19 = vpop.xlane.xlu0 %1015  ;;  %v1080_v51 = vsel %vm995_vm3, %v3060_v17, 0.0 }
 0x348   : > { %2351 = vpow2.f32 %v1058_v18  ;;  %v1041_v21 = vsub.f32 %v2961_v59, %v3062_v19  ;;  %1081 = vadd.xlane.f32.xlu0 %v1080_v51  ;;  %v1269_v18 = vsel %vm995_vm3, %v1240_v13, 0.0  ;;  %v1242_v51 = vsel %vm1229_vm13, %v2981_v12, 0.0 }
 0x349   : > { %v1275_v53 = vsel %vm995_vm3, %v1242_v51, 0.0 }
 0x34a   : > { %v3068_v22 = vpop.eup %2347  ;;  %v1060_v23 = vmul.f32 1.442695, %v1041_v21 }
 0x34b   : > { %v3070_v24 = vpop.xlane.xlu1 %1018  ;;  %v1083_v55 = vsel %vm995_vm3, %v3068_v22, 0.0 }
 0x34c   : > { %2353 = vpow2.f32 %v1060_v23  ;;  %v1042_v25 = vsub.f32 %v2966_v63, %v3070_v24  ;;  %1084 = vadd.xlane.f32.xlu1 %v1083_v55  ;;  %v1241_v23 = vsel %vm1228_vm14, %v2976_v8, 0.0 }
 0x34e   : > { %v3076_v26 = vpop.eup %2349  ;;  %v1062_v27 = vmul.f32 1.442695, %v1042_v25 }
 0x34f   : > { %v3078_v28 = vpop.xlane.xlu0 %1021  ;;  %v1086_v59 = vsel %vm995_vm3, %v3076_v26, 0.0 }
 0x350   : > { %2355 = vpow2.f32 %v1062_v27  ;;  %v1043_v30 = vsub.f32 %v2971_v3, %v3078_v28  ;;  %1087 = vadd.xlane.f32.xlu0 %v1086_v59  ;;  %v1239_v3 = vsel %vm1226_vm12, %v2966_v63, 0.0  ;;  %v1272_v63 = vsel %vm995_vm3, %v1241_v23, 0.0 }
 0x351   : > { %v1266_v21 = vsel %vm995_vm3, %v1239_v3, 0.0 }
 0x352   : > { %v3084_v31 = vpop.eup %2351  ;;  %v1064_v32 = vmul.f32 1.442695, %v1043_v30 }
 0x353   : > { %v3086_v33 = vpop.xlane.xlu1 %1024  ;;  %v1089_v34 = vsel %vm995_vm3, %v3084_v31, 0.0 }
 0x354   : > { %2357 = vpow2.f32 %v1064_v32  ;;  %v1044_v35 = vsub.f32 %v2976_v8, %v3086_v33  ;;  %1090 = vadd.xlane.f32.xlu1 %v1089_v34 }
 0x356   : > { %v3092_v37 = vpop.eup %2353  ;;  %v1066_v38 = vmul.f32 1.442695, %v1044_v35 }
 0x357   : > { %v3094_v39 = vpop.xlane.xlu0 %1027  ;;  %v1092_v40 = vsel %vm995_vm3, %v3092_v37, 0.0 }
 0x358   : > { %2359 = vpow2.f32 %v1066_v38  ;;  %v1045_v41 = vsub.f32 %v2981_v12, %v3094_v39  ;;  %1093 = vadd.xlane.f32.xlu0 %v1092_v40 }
 0x35a   : > { %v3100_v42 = vpop.eup %2355  ;;  %v1068_v44 = vmul.f32 1.442695, %v1045_v41 }
 0x35b   : > { %v3102_v45 = vpop.xlane.xlu1 %1030  ;;  %v1095_v46 = vsel %vm995_vm3, %v3100_v42, 0.0 }
 0x35c   : > { %2361 = vpow2.f32 %v1068_v44  ;;  %v1046_v48 = vsub.f32 %v2986_v16, %v3102_v45  ;;  %1096 = vadd.xlane.f32.xlu1 %v1095_v46 }
 0x35e   : > { %v3108_v49 = vpop.eup %2357  ;;  %v1070_v50 = vmul.f32 1.442695, %v1046_v48 }
 0x35f   : > { %v3110_v57 = vpop.xlane.xlu0 %1033  ;;  %v1098_v58 = vsel %vm995_vm3, %v3108_v49, 0.0  ;;  %v1215_v52 = vpop.permute.xlu1 %1214 }
 0x360   : > { %2363 = vpow2.f32 %v1070_v50  ;;  %v1047_v62 = vsub.f32 %v2991_v20, %v3110_v57  ;;  %1099 = vadd.xlane.f32.xlu0 %v1098_v58  ;;  %vm1230_vm0 = vcmp.eq.s32.totalorder %v2997_v29, %v1215_v52 }
 0x361   : > { %v1243_v60 = vsel %vm1230_vm0, %v2986_v16, 0.0 }
 0x362   : > { %v3116_v0 = vpop.eup %2359  ;;  %v1072_v2 = vmul.f32 1.442695, %v1047_v62  ;;  %v1278_v25 = vsel %vm995_vm3, %v1243_v60, 0.0 }
 0x363   : > { %v1101_v5 = vsel %vm995_vm3, %v3116_v0, 0.0 }
 0x364   : > { %2365 = vpow2.f32 %v1072_v2  ;;  %1102 = vadd.xlane.f32.xlu1 %v1101_v5 }
 0x366   : > { %v3120_v36 = vpop.eup %2361 }
 0x367   : > { %v1104_v9 = vsel %vm995_vm3, %v3120_v36, 0.0  ;;  %v1218_v15 = vpop.permute.xlu0 %1217 }
 0x368   : > { %1105 = vadd.xlane.f32.xlu0 %v1104_v9  ;;  %vm1231_vm15 = vcmp.eq.s32.totalorder %v2997_v29, %v1218_v15 }
 0x369   : > { %v1244_v55 = vsel %vm1231_vm15, %v2991_v20, 0.0 }
 0x36a   : > { %v3126_v4 = vpop.eup %2363  ;;  %v1281_v12 = vsel %vm995_vm3, %v1244_v55, 0.0 }
 0x36b   : > { %v1107_v11 = vsel %vm995_vm3, %v3126_v4, 0.0 }
 0x36c   : > { %1108 = vadd.xlane.f32.xlu1 %v1107_v11 }
 0x36e   : > { %v3135_v47 = vpop.eup %2365 }
 0x36f   : > { %v1110_v54 = vsel %vm995_vm3, %v3135_v47, 0.0 }
 0x370   : > { %1270 = vadd.xlane.f32.xlu1 %v1269_v18  ;;  %1111 = vadd.xlane.f32.xlu0 %v1110_v54 }
 0x374   : > { %1276 = vadd.xlane.f32.xlu1 %v1275_v53  ;;  %1267 = vadd.xlane.f32.xlu0 %v1266_v21 }
 0x378   : > { %1273 = vadd.xlane.f32.xlu0 %v1272_v63  ;;  %1282 = vadd.xlane.f32.xlu1 %v1281_v12 }
 0x37c   : > { %1279 = vadd.xlane.f32.xlu0 %v1278_v25 }
 0x390   : > { %v1247_v27 = vpop.xlane.xlu1 %1246 }
 0x391   : > { %v1284_v46 = vsub.f32 %v1247_v27, %v3026_v56 }
 0x394   : > { %v1253_v59 = vpop.xlane.xlu1 %1252  ;;  %v1250_v30 = vpop.xlane.xlu0 %1249 }
 0x398   : > { %v3154_v8 = vpop.xlane.xlu1 %1258  ;;  %v1256_v20 = vpop.xlane.xlu0 %1255 }
 0x39c   : > { %v3156_v32 = vpop.xlane.xlu1 %1264  ;;  %v3158_v29 = vpop.xlane.xlu0 %1261 }
 0x3cd   : > { %v1076_v34 = vpop.xlane.xlu1 %1075 }
 0x3ce   : > { %2367 = vrcp.f32 %v1076_v34 }
 0x3cf   : > { %2369 = vlog2.f32 %v1076_v34 }
 0x3d1   : > { %v1079_v35 = vpop.xlane.xlu0 %1078 }
 0x3d2   : > { %2371 = vrcp.f32 %v1079_v35 }
 0x3d3   : > { %2373 = vlog2.f32 %v1079_v35 }
 0x3d5   : > { %v1082_v16 = vpop.xlane.xlu0 %1081 }
 0x3d6   : > { %2375 = vrcp.f32 %v1082_v16 }
 0x3d7   : > { %2377 = vlog2.f32 %v1082_v16  ;;  %v1290_v16 = vsub.f32 %v3156_v32, %v3062_v19 }
 0x3d8   : > { %v2368_v38 = vpop.eup %2367 }
 0x3d9   : > { %v2370_v40 = vpop.eup %2369  ;;  %v1139_v41 = vmul.f32 %v2368_v38, %v3044_v7  ;;  %v1085_v44 = vpop.xlane.xlu1 %1084  ;;  %v1285_v7 = vsub.f32 %v1250_v30, %v3032_v61  ;;  %v1286_v61 = vsub.f32 %v1253_v59, %v3036_v1 }
 0x3da   : > { %v1298_v48 = vmul.f32 0.6931472, %v2370_v40  ;;  %2379 = vrcp.f32 %v1085_v44 }
 0x3db   : > { %1152 = vst.msk [vmem:[%s3163_s19] sm:$0xff] %vm995_vm3, %v1139_v41  ;;  %2381 = vlog2.f32 %v1085_v44 }
 0x3dc   : > { %v2372_v50 = vpop.eup %2371  ;;  %v1323_v58 = vsub.f32 %v1284_v46, %v1298_v48 }
 0x3dd   : > { %v2374_v62 = vpop.eup %2373  ;;  %v1140_v2 = vmul.f32 %v2372_v50, %v3052_v43  ;;  %v1088_v5 = vpop.xlane.xlu0 %1087 }
 0x3de   : > { %1337 = vst.msk [vmem:[%s3169_s30] sm:$0xff] %vm1336_vm1, %v1323_v58  ;;  %v1300_v56 = vmul.f32 0.6931472, %v2374_v62  ;;  %2383 = vrcp.f32 %v1088_v5 }
 0x3df   : > { %1153 = vst.msk [vmem:[%s3163_s19 + $0x8] sm:$0xff] %vm995_vm3, %v1140_v2  ;;  %2385 = vlog2.f32 %v1088_v5 }
 0x3e0   : > { %v2376_v9 = vpop.eup %2375  ;;  %v1324_v11 = vsub.f32 %v1285_v7, %v1300_v56 }
 0x3e1   : > { %v2378_v13 = vpop.eup %2377  ;;  %v1141_v43 = vmul.f32 %v2376_v9, %v3060_v17  ;;  %v1091_v15 = vpop.xlane.xlu1 %1090  ;;  %v1287_v17 = vsub.f32 %v1256_v20, %v3040_v6 }
 0x3e2   : > { %1338 = vst.msk [vmem:[%s3169_s30 + $0x8] sm:$0xff] %vm1336_vm1, %v1324_v11  ;;  %v1302_v18 = vmul.f32 0.6931472, %v2378_v13  ;;  %2387 = vrcp.f32 %v1091_v15 }
 0x3e3   : > { %1154 = vst.msk [vmem:[%s3163_s19 + $0x10] sm:$0xff] %vm995_vm3, %v1141_v43  ;;  %2389 = vlog2.f32 %v1091_v15 }
 0x3e4   : > { %v2380_v54 = vpop.eup %2379  ;;  %v1325_v51 = vsub.f32 %v1286_v61, %v1302_v18 }
 0x3e5   : > { %v2382_v3 = vpop.eup %2381  ;;  %v1142_v52 = vmul.f32 %v2380_v54, %v3068_v22  ;;  %v1094_v53 = vpop.xlane.xlu0 %1093  ;;  %v1288_v22 = vsub.f32 %v3154_v8, %v3046_v10 }
 0x3e6   : > { %1339 = vst.msk [vmem:[%s3169_s30 + $0x10] sm:$0xff] %vm1336_vm1, %v1325_v51  ;;  %v1304_v1 = vmul.f32 0.6931472, %v2382_v3  ;;  %2391 = vrcp.f32 %v1094_v53 }
 0x3e7   : > { %1155 = vst.msk [vmem:[%s3163_s19 + $0x18] sm:$0xff] %vm995_vm3, %v1142_v52  ;;  %2393 = vlog2.f32 %v1094_v53 }
 0x3e8   : > { %v2384_v21 = vpop.eup %2383  ;;  %v1326_v23 = vsub.f32 %v1287_v17, %v1304_v1 }
 0x3e9   : > { %v2386_v55 = vpop.eup %2385  ;;  %v1143_v63 = vmul.f32 %v2384_v21, %v3076_v26  ;;  %v1097_v12 = vpop.xlane.xlu1 %1096  ;;  %v1289_v26 = vsub.f32 %v3158_v29, %v3054_v14 }
 0x3ea   : > { %1340 = vst.msk [vmem:[%s3169_s30 + $0x18] sm:$0xff] %vm1336_vm1, %v1326_v23  ;;  %v1306_v6 = vmul.f32 0.6931472, %v2386_v55  ;;  %2395 = vrcp.f32 %v1097_v12 }
 0x3eb   : > { %1156 = vst.msk [vmem:[%s3163_s19 + $0x20] sm:$0xff] %vm995_vm3, %v1143_v63 }
 0x3ec   : > { %v2388_v60 = vpop.eup %2387  ;;  %v1327_v25 = vsub.f32 %v1288_v22, %v1306_v6 }
 0x3ed   : > { %v2390_v27 = vpop.eup %2389  ;;  %v1144_v59 = vmul.f32 %v2388_v60, %v3084_v31  ;;  %v1100_v30 = vpop.xlane.xlu0 %1099 }
 0x3ee   : > { %1341 = vst.msk [vmem:[%s3169_s30 + $0x20] sm:$0xff] %vm1336_vm1, %v1327_v25  ;;  %v1308_v10 = vmul.f32 0.6931472, %v2390_v27  ;;  %2397 = vrcp.f32 %v1100_v30 }
 0x3ef   : > { %1157 = vst.msk [vmem:[%s3163_s19 + $0x28] sm:$0xff] %vm995_vm3, %v1144_v59  ;;  %2399 = vlog2.f32 %v1100_v30 }
 0x3f0   : > { %v2392_v8 = vpop.eup %2391  ;;  %v1328_v20 = vsub.f32 %v1289_v26, %v1308_v10 }
 0x3f1   : > { %v2394_v34 = vpop.eup %2393  ;;  %v1145_v35 = vmul.f32 %v2392_v8, %v3092_v37  ;;  %v1103_v31 = vpop.xlane.xlu1 %1102 }
 0x3f2   : > { %1342 = vst.msk [vmem:[%s3169_s30 + $0x28] sm:$0xff] %vm1336_vm1, %v1328_v20  ;;  %v1310_v14 = vmul.f32 0.6931472, %v2394_v34  ;;  %2401 = vrcp.f32 %v1103_v31 }
 0x3f3   : > { %1158 = vst.msk [vmem:[%s3163_s19 + $0x30] sm:$0xff] %vm995_vm3, %v1145_v35  ;;  %2403 = vlog2.f32 %v1097_v12 }
 0x3f4   : > { %v2396_v29 = vpop.eup %2395  ;;  %v1329_v38 = vsub.f32 %v1290_v16, %v1310_v14 }
 0x3f5   : > { %v1146_v40 = vmul.f32 %v2396_v29, %v3100_v42  ;;  %v1106_v41 = vpop.xlane.xlu0 %1105 }
 0x3f6   : > { %1343 = vst.msk [vmem:[%s3169_s30 + $0x30] sm:$0xff] %vm1336_vm1, %v1329_v38  ;;  %2405 = vrcp.f32 %v1106_v41 }
 0x3f7   : > { %1159 = vst.msk [vmem:[%s3163_s19 + $0x38] sm:$0xff] %vm995_vm3, %v1146_v40  ;;  %2407 = vlog2.f32 %v1106_v41 }
 0x3f8   : > { %v2398_v19 = vpop.eup %2397  ;;  %2409 = vlog2.f32 %v1103_v31 }
 0x3f9   : > { %v1147_v37 = vmul.f32 %v2398_v19, %v3108_v49  ;;  %v1109_v32 = vpop.xlane.xlu1 %1108  ;;  %v2400_v44 = vpop.eup %2399 }
 0x3fa   : > { %2411 = vrcp.f32 %v1109_v32  ;;  %v1314_v62 = vmul.f32 0.6931472, %v2400_v44 }
 0x3fb   : > { %1160 = vst.msk [vmem:[%s3163_s19 + $0x40] sm:$0xff] %vm995_vm3, %v1147_v37  ;;  %2413 = vlog2.f32 %v1109_v32 }
 0x3fc   : > { %v2402_v46 = vpop.eup %2401 }
 0x3fd   : > { %v1148_v42 = vmul.f32 %v2402_v46, %v3116_v0  ;;  %v1271_v48 = vpop.xlane.xlu1 %1270  ;;  %v1112_v50 = vpop.xlane.xlu0 %1111 }
 0x3fe   : > { %v1292_v58 = vsub.f32 %v1271_v48, %v3078_v28  ;;  %2415 = vrcp.f32 %v1112_v50  ;;  %v2404_v2 = vpop.eup %2403 }
 0x3ff   : > { %1161 = vst.msk [vmem:[%s3163_s19 + $0x48] sm:$0xff] %vm995_vm3, %v1148_v42  ;;  %2417 = vlog2.f32 %v1112_v50  ;;  %v1312_v13 = vmul.f32 0.6931472, %v2404_v2 }
 0x400   : > { %v2406_v49 = vpop.eup %2405  ;;  %v1331_v5 = vsub.f32 %v1292_v58, %v1314_v62 }
 0x401   : > { %v2408_v7 = vpop.eup %2407  ;;  %v1149_v56 = vmul.f32 %v2406_v49, %v3120_v36  ;;  %v1277_v0 = vpop.xlane.xlu1 %1276 }
 0x402   : > { %v1268_v9 = vpop.xlane.xlu0 %1267  ;;  %1345 = vst.msk [vmem:[%s3169_s30 + $0x40] sm:$0xff] %vm1336_vm1, %v1331_v5  ;;  %v1294_v28 = vsub.f32 %v1277_v0, %v3094_v39  ;;  %v1318_v11 = vmul.f32 0.6931472, %v2408_v7  ;;  %v2410_v15 = vpop.eup %2409 }
 0x403   : > { %v1291_v43 = vsub.f32 %v1268_v9, %v3070_v24  ;;  %1162 = vst.msk [vmem:[%s3163_s19 + $0x50] sm:$0xff] %vm995_vm3, %v1149_v56  ;;  %v1316_v39 = vmul.f32 0.6931472, %v2410_v15 }
 0x404   : > { %v2412_v61 = vpop.eup %2411  ;;  %v1333_v18 = vsub.f32 %v1294_v28, %v1318_v11 }
 0x405   : > { %v1330_v54 = vsub.f32 %v1291_v43, %v1312_v13  ;;  %v1150_v36 = vmul.f32 %v2412_v61, %v3126_v4  ;;  %v2414_v52 = vpop.eup %2413  ;;  %v1283_v24 = vpop.xlane.xlu1 %1282 }
 0x406   : > { %v1274_v51 = vpop.xlane.xlu0 %1273  ;;  %1347 = vst.msk [vmem:[%s3169_s30 + $0x50] sm:$0xff] %vm1336_vm1, %v1333_v18  ;;  %v1296_v23 = vsub.f32 %v1283_v24, %v3110_v57  ;;  %v1320_v63 = vmul.f32 0.6931472, %v2414_v52 }
 0x407   : > { %1344 = vst.msk [vmem:[%s3169_s30 + $0x38] sm:$0xff] %vm1336_vm1, %v1330_v54  ;;  %v1293_v3 = vsub.f32 %v1274_v51, %v3086_v33 }
 0x408   : > { %1163 = vst.msk [vmem:[%s3163_s19 + $0x58] sm:$0xff] %vm995_vm3, %v1150_v36  ;;  %v2416_v53 = vpop.eup %2415 }
 0x409   : > { %v1332_v17 = vsub.f32 %v1293_v3, %v1316_v39  ;;  %v2418_v1 = vpop.eup %2417  ;;  %v1151_v4 = vmul.f32 %v2416_v53, %v3135_v47  ;;  %1360 = sbr.rel (!%p2658_p4) target bundleno = 1101 (0x44d), region = 56 }
 0x40a   : > { %v1280_v21 = vpop.xlane.xlu0 %1279  ;;  %v1322_v55 = vmul.f32 0.6931472, %v2418_v1 }
 0x40b   : > { %1346 = vst.msk [vmem:[%s3169_s30 + $0x48] sm:$0xff] %vm1336_vm1, %v1332_v17  ;;  %v1295_v33 = vsub.f32 %v1280_v21, %v3102_v45 }
 0x40c   : > { %1164 = vst.msk [vmem:[%s3163_s19 + $0x60] sm:$0xff] %vm995_vm3, %v1151_v4  ;;  %v1335_v12 = vsub.f32 %v1296_v23, %v1322_v55 }
 0x40d   : > { %v1334_v22 = vsub.f32 %v1295_v33, %v1320_v63 }
 0x40e   : > { %1349 = vst.msk [vmem:[%s3169_s30 + $0x60] sm:$0xff] %vm1336_vm1, %v1335_v12 }
 0x40f   : > { %1348 = vst.msk [vmem:[%s3169_s30 + $0x58] sm:$0xff] %vm1336_vm1, %v1334_v22 }
 0x410   : > { %s3441_s20 = smov (!%p1363_p8, %s1362_s20), 13 }
 0x411   : > { %s1917_s26 = sshll.u32 %s3441_s20, 7 }
 0x412   : > { %p1920_p9 = scmp.eq.s32.totalorder %s1917_s26, 0 }
 0x413   : > { %2419 = sdivrem.u32 (!%p1920_p9), %s3441_s20, 13 }
 0x414   : > { %1371 = sbr.rel (%p1920_p9) target bundleno = 1101 (0x44d), region = 60 }
 0x41c   : > { %s3259_s27 = spop.drf %2419 }
 0x41d   : > { %p1921_p10 = scmp.le.s32.totalorder %s3259_s27, 0 }
 0x41e   : > { %s3431_s23 = smov (!%p1921_p10), %s3253_s25  ;;  %s3432_s28 = smov (!%p1921_p10), %s3163_s19 }
 0x41f   : > { %1782 = sbr.rel (%p1921_p10) target bundleno = 1072 (0x430), region = 211  ;;  %s3268_s29 = smov (!%p1921_p10), 0  }
 0x420   : > { %s3270_s11 = smov (!%p1921_p10), 0  }
 0x426 LB: >> { %v1459_v45 = vld [vmem:[%s2521_s28] sm:$0xff]  ;;  %v1461_v57 = vld [vmem:[%s2521_s28 + $0x8] sm:$0xff]  ;;  %v1463_v47 = vld [vmem:[%s2521_s28 + $0x10] sm:$0xff]  ;;  %s1485_s15 = sadd.s32 1, %s2525_s29  ;;  %s1453_s11 = sadd.s32 1, %s2529_s11   ;;  %s2529_s11 = sphi %s3270_s11, %s1453_s11   ;;  %s2525_s29 = sphi %s3268_s29, %s3433_s29   ;;  %s2521_s28 = sphi %s3432_s28, %s1490_s28   ;;  %s2517_s23 = sphi %s3431_s23, %s1491_s23  }
 0x427   : >> { %1460 = vst [vmem:[%s2517_s23] sm:$0xff] %v1459_v45  ;;  %1462 = vst [vmem:[%s2517_s23 + $0x8] sm:$0xff] %v1461_v57  ;;  %v1465_v6 = vld [vmem:[%s2521_s28 + $0x18] sm:$0xff]  ;;  %v1467_v60 = vld [vmem:[%s2521_s28 + $0x20] sm:$0xff]  ;;  %p1486_p11 = scmp.ge.s32.totalorder %s1485_s15, %s3259_s27  ;;  %p1452_p12 = scmp.ge.s32.totalorder %s1453_s11, %s3259_s27 }
 0x428   : >> { %1464 = vst [vmem:[%s2517_s23 + $0x10] sm:$0xff] %v1463_v47  ;;  %v1469_v25 = vld [vmem:[%s2521_s28 + $0x28] sm:$0xff]  ;;  %1466 = vst [vmem:[%s2517_s23 + $0x18] sm:$0xff] %v1465_v6  ;;  %v1471_v27 = vld [vmem:[%s2521_s28 + $0x30] sm:$0xff] }
 0x429   : >> { %1468 = vst [vmem:[%s2517_s23 + $0x20] sm:$0xff] %v1467_v60  ;;  %1470 = vst [vmem:[%s2517_s23 + $0x28] sm:$0xff] %v1469_v25  ;;  %v1473_v59 = vld [vmem:[%s2521_s28 + $0x38] sm:$0xff]  ;;  %v1475_v30 = vld [vmem:[%s2521_s28 + $0x40] sm:$0xff]  ;;  %s3443_s15 = smov (%p1486_p11, %s1485_s15), 0  ;;  %1455 = sbr.rel (!%p1452_p12) target bundleno = 1062 (0x426), region = 217 }
 0x42a   : >> { %1472 = vst [vmem:[%s2517_s23 + $0x30] sm:$0xff] %v1471_v27  ;;  %1474 = vst [vmem:[%s2517_s23 + $0x38] sm:$0xff] %v1473_v59  ;;  %v1477_v26 = vld [vmem:[%s2521_s28 + $0x48] sm:$0xff]  ;;  %v1479_v10 = vld [vmem:[%s2521_s28 + $0x50] sm:$0xff]  ;;  %s1488_s18 = smul.u32 104, %s3443_s15  ;;  %s3433_s29 = smov %s3443_s15 }
 0x42b   : >> { %1476 = vst [vmem:[%s2517_s23 + $0x40] sm:$0xff] %v1475_v30  ;;  %v1481_v8 = vld [vmem:[%s2521_s28 + $0x58] sm:$0xff]  ;;  %1478 = vst [vmem:[%s2517_s23 + $0x48] sm:$0xff] %v1477_v26  ;;  %v1483_v20 = vld [vmem:[%s2521_s28 + $0x60] sm:$0xff] }
 0x42c   : >> { %1480 = vst [vmem:[%s2517_s23 + $0x50] sm:$0xff] %v1479_v10  ;;  %1482 = vst [vmem:[%s2517_s23 + $0x58] sm:$0xff] %v1481_v8  ;;  %s1490_s28 = scalar_lea.vmem %s3163_s19, %s1488_s18 [#allocation2]  }
 0x42d   : >> { %1484 = vst [vmem:[%s2517_s23 + $0x60] sm:$0xff] %v1483_v20  ;;  %s1491_s23 = scalar_lea.vmem %s3253_s25, %s1488_s18  }
 0x430 PF: > { %2421 = sdivrem.u32 %s3441_s20, 13 }
 0x431   : > { %s1922_s21 = smul.u32 104, %s3259_s27 }
 0x433   : > { %s1496_s24 = scalar_lea.vmem %s3163_s19, %s1922_s21 [#allocation2]   ;;  %s1498_s14 = scalar_lea.vmem %s3253_s25, %s1922_s21  }
 0x439   : > { %s2422_s26 = spop.drf %2421 }
 0x43a   : > { %p1924_p13 = scmp.le.s32.totalorder %s2422_s26, 0 }
 0x43b   : > { %s2531_s18 = smov (!%p1924_p13), %s1498_s14   ;;  %s2535_s0 = smov (!%p1924_p13), %s1496_s24  }
 0x43c   : > { %1796 = sbr.rel (%p1924_p13) target bundleno = 1101 (0x44d), region = 222  ;;  %s2539_s1 = smov (!%p1924_p13), 0  }
 0x43d   : > { %s2543_s2 = smov (!%p1924_p13), 0  }
 0x443 LB: >> { %v1508_v34 = vld [vmem:[%s2537_s0] sm:$0xff]  ;;  %s1510_s23 = sadd.s32 1, %s2541_s1  ;;  %s1502_s2 = sadd.s32 1, %s2545_s2   ;;  %s2545_s2 = sphi %s2543_s2, %s1502_s2   ;;  %s2541_s1 = sphi %s2539_s1, %s2540_s1   ;;  %s2537_s0 = sphi %s2535_s0, %s1515_s0   ;;  %s2533_s18 = sphi %s2531_s18, %s1516_s18  }
 0x444   : >> { %1509 = vst [vmem:[%s2533_s18] sm:$0xff] %v1508_v34  ;;  %p1511_p0 = scmp.ge.s32.totalorder %s1510_s23, %s2422_s26  ;;  %p1501_p1 = scmp.ge.s32.totalorder %s1502_s2, %s2422_s26 }
 0x446   : >> { %s3445_s23 = smov (%p1511_p0, %s1510_s23), 0  ;;  %1504 = sbr.rel (!%p1501_p1) target bundleno = 1091 (0x443), region = 228 }
 0x447   : >> { %s1925_s19 = sshll.u32 %s3445_s23, 3  ;;  %s2540_s1 = smov %s3445_s23  }
 0x448   : >> { %s1515_s0 = scalar_lea.vmem %s1496_s24, %s1925_s19 [#allocation2]   ;;  %s1516_s18 = scalar_lea.vmem %s1498_s14, %s1925_s19  }
 0x44d PF: > { %1522 = sbr.rel (!%p2658_p4) target bundleno = 1169 (0x491), region = 108  ;;  %s1524_s1 = ssub.s32 (%p2658_p4), 25, %s2669_s22 }
 0x44e   : > { %s1940_s20 = smul.u32 (%p2658_p4), 104, %s2646_s12  ;;  %p1525_p2 = scmp.lt.s32.totalorder (%p2658_p4), %s1524_s1, 13 }
 0x450   : > { %s3332_s28 = scalar_lea.vmem (%p2658_p4), %s3423_s9, %s1940_s20  }
 0x454   : > { %s3447_s1 = smov (!%p1525_p2, %s1524_s1), 13 }
 0x455   : > { %s1927_s0 = sshll.u32 %s3447_s1, 7 }
 0x456   : > { %p1930_p3 = scmp.eq.s32.totalorder %s1927_s0, 0 }
 0x457   : > { %2423 = sdivrem.u32 (!%p1930_p3), %s3447_s1, 13 }
 0x458   : > { %1533 = sbr.rel (%p1930_p3) target bundleno = 1169 (0x491), region = 112 }
 0x460   : > { %s3338_s2 = spop.drf %2423 }
 0x461   : > { %p1931_p4 = scmp.le.s32.totalorder %s3338_s2, 0 }
 0x462   : > { %s3434_s12 = smov (!%p1931_p4), %s3332_s28  ;;  %s3435_s17 = smov (!%p1931_p4), %s3169_s30 }
 0x463   : > { %1810 = sbr.rel (%p1931_p4) target bundleno = 1140 (0x474), region = 233  ;;  %s3347_s22 = smov (!%p1931_p4), 0  }
 0x464   : > { %s3349_s29 = smov (!%p1931_p4), 0  }
 0x46a LB: >> { %v1621_v35 = vld [vmem:[%s2553_s17] sm:$0xff]  ;;  %v1623_v31 = vld [vmem:[%s2553_s17 + $0x8] sm:$0xff]  ;;  %v1625_v16 = vld [vmem:[%s2553_s17 + $0x10] sm:$0xff]  ;;  %s1647_s11 = sadd.s32 1, %s2557_s22  ;;  %s1615_s29 = sadd.s32 1, %s2561_s29   ;;  %s2561_s29 = sphi %s3349_s29, %s1615_s29   ;;  %s2557_s22 = sphi %s3347_s22, %s3436_s22   ;;  %s2553_s17 = sphi %s3435_s17, %s1652_s17   ;;  %s2549_s12 = sphi %s3434_s12, %s1653_s12  }
 0x46b   : >> { %1622 = vst [vmem:[%s2549_s12] sm:$0xff] %v1621_v35  ;;  %1624 = vst [vmem:[%s2549_s12 + $0x8] sm:$0xff] %v1623_v31  ;;  %v1627_v14 = vld [vmem:[%s2553_s17 + $0x18] sm:$0xff]  ;;  %v1629_v29 = vld [vmem:[%s2553_s17 + $0x20] sm:$0xff]  ;;  %p1648_p5 = scmp.ge.s32.totalorder %s1647_s11, %s3338_s2  ;;  %p1614_p6 = scmp.ge.s32.totalorder %s1615_s29, %s3338_s2 }
 0x46c   : >> { %1626 = vst [vmem:[%s2549_s12 + $0x10] sm:$0xff] %v1625_v16  ;;  %v1631_v38 = vld [vmem:[%s2553_s17 + $0x28] sm:$0xff]  ;;  %1628 = vst [vmem:[%s2549_s12 + $0x18] sm:$0xff] %v1627_v14  ;;  %v1633_v40 = vld [vmem:[%s2553_s17 + $0x30] sm:$0xff] }
 0x46d   : >> { %1630 = vst [vmem:[%s2549_s12 + $0x20] sm:$0xff] %v1629_v29  ;;  %1632 = vst [vmem:[%s2549_s12 + $0x28] sm:$0xff] %v1631_v38  ;;  %v1635_v41 = vld [vmem:[%s2553_s17 + $0x38] sm:$0xff]  ;;  %v1637_v19 = vld [vmem:[%s2553_s17 + $0x40] sm:$0xff]  ;;  %s3449_s11 = smov (%p1648_p5, %s1647_s11), 0  ;;  %1617 = sbr.rel (!%p1614_p6) target bundleno = 1130 (0x46a), region = 239 }
 0x46e   : >> { %1634 = vst [vmem:[%s2549_s12 + $0x30] sm:$0xff] %v1633_v40  ;;  %1636 = vst [vmem:[%s2549_s12 + $0x38] sm:$0xff] %v1635_v41  ;;  %v1639_v37 = vld [vmem:[%s2553_s17 + $0x48] sm:$0xff]  ;;  %v1641_v32 = vld [vmem:[%s2553_s17 + $0x50] sm:$0xff]  ;;  %s1650_s15 = smul.u32 104, %s3449_s11  ;;  %s3436_s22 = smov %s3449_s11 }
 0x46f   : >> { %1638 = vst [vmem:[%s2549_s12 + $0x40] sm:$0xff] %v1637_v19  ;;  %v1643_v44 = vld [vmem:[%s2553_s17 + $0x58] sm:$0xff]  ;;  %1640 = vst [vmem:[%s2549_s12 + $0x48] sm:$0xff] %v1639_v37  ;;  %v1645_v46 = vld [vmem:[%s2553_s17 + $0x60] sm:$0xff] }
 0x470   : >> { %1642 = vst [vmem:[%s2549_s12 + $0x50] sm:$0xff] %v1641_v32  ;;  %1644 = vst [vmem:[%s2549_s12 + $0x58] sm:$0xff] %v1643_v44  ;;  %s1652_s17 = scalar_lea.vmem %s3169_s30, %s1650_s15 [#allocation3]  }
 0x471   : >> { %1646 = vst [vmem:[%s2549_s12 + $0x60] sm:$0xff] %v1645_v46  ;;  %s1653_s12 = scalar_lea.vmem %s3332_s28, %s1650_s15  }
 0x474 PF: > { %2425 = sdivrem.u32 %s3447_s1, 13 }
 0x475   : > { %s1932_s21 = smul.u32 104, %s3338_s2 }
 0x477   : > { %s1658_s24 = scalar_lea.vmem %s3169_s30, %s1932_s21 [#allocation3]   ;;  %s1660_s14 = scalar_lea.vmem %s3332_s28, %s1932_s21  }
 0x47d   : > { %s2426_s26 = spop.drf %2425 }
 0x47e   : > { %p1934_p7 = scmp.le.s32.totalorder %s2426_s26, 0 }
 0x47f   : > { %s2563_s18 = smov (!%p1934_p7), %s1660_s14   ;;  %s2567_s23 = smov (!%p1934_p7), %s1658_s24  }
 0x480   : > { %1824 = sbr.rel (%p1934_p7) target bundleno = 1169 (0x491), region = 244  ;;  %s2571_s19 = smov (!%p1934_p7), 0  }
 0x481   : > { %s2575_s20 = smov (!%p1934_p7), 0  }
 0x487 LB: >> { %v1670_v42 = vld [vmem:[%s2569_s23] sm:$0xff]  ;;  %s1672_s25 = sadd.s32 1, %s2573_s19  ;;  %s1664_s20 = sadd.s32 1, %s2577_s20   ;;  %s2577_s20 = sphi %s2575_s20, %s1664_s20   ;;  %s2573_s19 = sphi %s2571_s19, %s2572_s19   ;;  %s2569_s23 = sphi %s2567_s23, %s1677_s23   ;;  %s2565_s18 = sphi %s2563_s18, %s1678_s18  }
 0x488   : >> { %1671 = vst [vmem:[%s2565_s18] sm:$0xff] %v1670_v42  ;;  %p1673_p8 = scmp.ge.s32.totalorder %s1672_s25, %s2426_s26  ;;  %p1663_p9 = scmp.ge.s32.totalorder %s1664_s20, %s2426_s26 }
 0x48a   : >> { %s3451_s25 = smov (%p1673_p8, %s1672_s25), 0  ;;  %1666 = sbr.rel (!%p1663_p9) target bundleno = 1159 (0x487), region = 250 }
 0x48b   : >> { %s1935_s30 = sshll.u32 %s3451_s25, 3  ;;  %s2572_s19 = smov %s3451_s25  }
 0x48c   : >> { %s1677_s23 = scalar_lea.vmem %s1658_s24, %s1935_s30 [#allocation3]   ;;  %s1678_s18 = scalar_lea.vmem %s1660_s14, %s1935_s30  }
 0x491 PF: > { %p17_p10 = scmp.ge.s32.totalorder %s2648_s13, 4   ;;  %s3437_s30 = smov %s2509_s10 }
 0x492   : > { %s3438_s10 = smov %s2656_s16  ;;  %s3439_s11 = smov %s2648_s13 }
 0x493   :  { %19 = sbr.rel (!%p17_p10) target bundleno = 6 (0x6), region = 261 }

</bundles_post_ra>
